<compile_context>
chip_gen: v6e
topology: v6e:2x2x1
jax: 0.10.0
libtpu: 0.0.40
codegen_flags: <defaults>
</compile_context>

<pallas_src>
import jax
import jax.numpy as jnp
from jax.experimental import pallas as pl
from jax.experimental.pallas import tpu as pltpu

# ---- small synthetic BERT config (bert-base-uncased scaled down) ----
VOCAB = 100
MAX_POS = 32
TYPE_VOCAB = 2
HIDDEN = 32
NUM_HEADS = 4
HEAD_DIM = HIDDEN // NUM_HEADS
INTER = 64
NUM_LAYERS = 2
NUM_LABELS = 2
LN_EPS = 1e-12
ATTN_SCALE = 1.0 / (HEAD_DIM ** 0.5)

# TODO(synk): loading real pretrained `bert-base-uncased` weights / tokenizer is out of
# scope here; this is a randomly-initialized, scaled-down config with identical structure.


# --------------------------- kernel helpers ---------------------------

def _layernorm(x, g, b):
    mu = jnp.mean(x, axis=-1, keepdims=True)
    xc = x - mu
    var = jnp.mean(xc * xc, axis=-1, keepdims=True)   # two-pass form (robust)
    return xc * jax.lax.rsqrt(var + LN_EPS) * g + b


def _gelu(x):
    # TODO(synk): HuggingFace BERT default is exact erf-GELU; tanh approximation used
    # for TPU-lowering safety (small numeric drift vs PyTorch reference).
    return 0.5 * x * (1.0 + jnp.tanh(0.7978845608028654 * (x + 0.044715 * x * x * x)))


# --------------------------- fused forward kernel ---------------------------
# One grid step == one sequence (batch is the parallel grid axis).

def _bert_fwd_kernel(emb_ref, emb_g_ref, emb_b_ref,
                     wqkv_ref, bqkv_ref, wo_ref, bo_ref, ln1g_ref, ln1b_ref,
                     wi_ref, bi_ref, wo2_ref, bo2_ref, ln2g_ref, ln2b_ref,
                     pool_w_ref, pool_b_ref, cls_w_ref, cls_b_ref, onehot_ref,
                     logits_ref, loss_ref):
    f32 = jnp.float32
    bf16 = jnp.bfloat16

    # embeddings LayerNorm (embedding gather/sum done as XLA glue outside the kernel)
    h = _layernorm(emb_ref[0], emb_g_ref[...], emb_b_ref[...])          # (S, H) f32

    # static unroll over layers; weights are bf16 MXU operands, accumulation in f32
    for layer in range(NUM_LAYERS):
        # fused QKV projection: one (S,H) x (H,3H) matmul + fused bias
        qkv = (jnp.dot(h.astype(bf16), wqkv_ref[layer],
                       preferred_element_type=f32) + bqkv_ref[layer])    # (S, 3H) f32
        qkv_b = qkv.astype(bf16)

        # head split kept entirely in vregs: stack static lane-slices -> (nh, S, hd)
        def _heads(base):
            return jnp.stack(
                [qkv_b[:, base + i * HEAD_DIM: base + (i + 1) * HEAD_DIM]
                 for i in range(NUM_HEADS)], axis=0)
        qh = _heads(0)               # 1/sqrt(hd) already folded into w_qkv/b_qkv
        kh = _heads(HIDDEN)
        vh = _heads(2 * HIDDEN)

        # head-batched attention: one MXU stream per stage
        s = jnp.einsum('hqd,hkd->hqk', qh, kh,
                       preferred_element_type=f32)                        # (nh, S, S)
        # TODO(synk): attention mask elided — wrapper always builds an all-valid mask.
        s = s - jnp.max(s, axis=-1, keepdims=True)
        p = jnp.exp(s)
        p = p * pl.reciprocal(jnp.sum(p, axis=-1, keepdims=True), approx=True)
        ctx = jnp.einsum('hqk,hkd->hqd', p.astype(bf16), vh,
                         preferred_element_type=f32)                      # (nh, S, hd)

        # merge heads back to (S, H) without any scratch stores
        ctx_m = jnp.concatenate([ctx[i] for i in range(NUM_HEADS)], axis=-1)

        attn_out = (jnp.dot(ctx_m.astype(bf16), wo_ref[layer],
                            preferred_element_type=f32) + bo_ref[layer])
        h = _layernorm(h + attn_out, ln1g_ref[layer], ln1b_ref[layer])

        inter = (jnp.dot(h.astype(bf16), wi_ref[layer],
                         preferred_element_type=f32) + bi_ref[layer])
        inter = _gelu(inter)
        ffn = (jnp.dot(inter.astype(bf16), wo2_ref[layer],
                       preferred_element_type=f32) + bo2_ref[layer])
        h = _layernorm(h + ffn, ln2g_ref[layer], ln2b_ref[layer])

    # pooler + classifier + per-example cross-entropy, fused tail on the CLS row
    cls = h[0:1, :]                                                       # (1, H)
    pooled = jnp.tanh(jnp.dot(cls.astype(bf16), pool_w_ref[...],
                              preferred_element_type=f32) + pool_b_ref[...])
    logits = (jnp.dot(pooled.astype(bf16), cls_w_ref[...],
                      preferred_element_type=f32) + cls_b_ref[...])       # (1, L)
    logits_ref[0] = logits

    z = logits - jnp.max(logits, axis=-1, keepdims=True)
    lse = jnp.log(jnp.sum(jnp.exp(z), axis=-1, keepdims=True))
    loss_ref[0] = -jnp.sum(onehot_ref[0] * (z - lse), axis=-1, keepdims=True)


# --------------------------- params & wrapper ---------------------------

def init_params(key):
    ks = iter(jax.random.split(key, 16))

    def w(shape, dtype=jnp.float32):
        return (0.02 * jax.random.normal(next(ks), shape)).astype(dtype)

    def zeros(shape):
        return jnp.zeros(shape, jnp.float32)

    def ones(shape):
        return jnp.ones(shape, jnp.float32)

    # fused QKV projection with 1/sqrt(head_dim) folded into the Q block at init time
    w_qkv = 0.02 * jax.random.normal(next(ks), (NUM_LAYERS, HIDDEN, 3 * HIDDEN))
    w_qkv = w_qkv.at[:, :, :HIDDEN].multiply(ATTN_SCALE)
    b_qkv = zeros((NUM_LAYERS, 1, 3 * HIDDEN))
    b_qkv = b_qkv.at[:, :, :HIDDEN].multiply(ATTN_SCALE)

    return {
        "word_emb": w((VOCAB, HIDDEN)),
        "pos_emb": w((MAX_POS, HIDDEN)),
        "type_emb": w((TYPE_VOCAB, HIDDEN)),
        "emb_ln_g": ones((1, HIDDEN)),
        "emb_ln_b": zeros((1, HIDDEN)),
        # MXU weight matrices stored in bf16 (f32 accumulate inside the kernel);
        # biases / LayerNorm params stay f32.
        "w_qkv": w_qkv.astype(jnp.bfloat16),
        "b_qkv": b_qkv,
        "w_attn_out": w((NUM_LAYERS, HIDDEN, HIDDEN), jnp.bfloat16),
        "b_attn_out": zeros((NUM_LAYERS, 1, HIDDEN)),
        "ln1_g": ones((NUM_LAYERS, 1, HIDDEN)),
        "ln1_b": zeros((NUM_LAYERS, 1, HIDDEN)),
        "w_inter": w((NUM_LAYERS, HIDDEN, INTER), jnp.bfloat16),
        "b_inter": zeros((NUM_LAYERS, 1, INTER)),
        "w_ffn_out": w((NUM_LAYERS, INTER, HIDDEN), jnp.bfloat16),
        "b_ffn_out": zeros((NUM_LAYERS, 1, HIDDEN)),
        "ln2_g": ones((NUM_LAYERS, 1, HIDDEN)),
        "ln2_b": zeros((NUM_LAYERS, 1, HIDDEN)),
        "pool_w": w((HIDDEN, HIDDEN), jnp.bfloat16),
        "pool_b": zeros((1, HIDDEN)),
        "cls_w": w((HIDDEN, NUM_LABELS), jnp.bfloat16),
        "cls_b": zeros((1, NUM_LABELS)),
    }


def bert_forward(params, text, label):
    """text: (B, S) int32 token ids; label: (B,) int32 class ids.
    Returns (loss, logits) like BertForSequenceClassification(text, labels=label)[:2]."""
    B, S = text.shape

    # embedding lookups are data-dependent gathers -> XLA glue; everything else is one
    # fused Pallas kernel with batch as a parallel grid axis.
    word = jnp.take(params["word_emb"], text, axis=0)                 # (B, S, H)
    pos = params["pos_emb"][:S][None, :, :]                           # (1, S, H)
    tok = params["type_emb"][0][None, None, :]                        # (1, 1, H)
    emb = (word + pos + tok).astype(jnp.float32)                      # (B, S, H)

    # TODO(synk): attention mask is all-valid for this wrapper, so it is statically
    # elided inside the kernel (padding tokens would need the additive mask restored).

    onehot = jax.nn.one_hot(label, NUM_LABELS, dtype=jnp.float32)[:, None, :]  # (B,1,L)

    def _rep(x):  # weight replicated across batch grid steps (DMA'd once, VMEM-resident)
        nd = x.ndim
        return pl.BlockSpec(x.shape, lambda b, _nd=nd: (0,) * _nd)

    inputs = (
        emb, params["emb_ln_g"], params["emb_ln_b"],
        params["w_qkv"], params["b_qkv"],
        params["w_attn_out"], params["b_attn_out"],
        params["ln1_g"], params["ln1_b"],
        params["w_inter"], params["b_inter"],
        params["w_ffn_out"], params["b_ffn_out"],
        params["ln2_g"], params["ln2_b"],
        params["pool_w"], params["pool_b"],
        params["cls_w"], params["cls_b"],
        onehot,
    )

    in_specs = [
        pl.BlockSpec((1, S, HIDDEN), lambda b: (b, 0, 0)),            # emb
        _rep(params["emb_ln_g"]), _rep(params["emb_ln_b"]),
        _rep(params["w_qkv"]), _rep(params["b_qkv"]),
        _rep(params["w_attn_out"]), _rep(params["b_attn_out"]),
        _rep(params["ln1_g"]), _rep(params["ln1_b"]),
        _rep(params["w_inter"]), _rep(params["b_inter"]),
        _rep(params["w_ffn_out"]), _rep(params["b_ffn_out"]),
        _rep(params["ln2_g"]), _rep(params["ln2_b"]),
        _rep(params["pool_w"]), _rep(params["pool_b"]),
        _rep(params["cls_w"]), _rep(params["cls_b"]),
        pl.BlockSpec((1, 1, NUM_LABELS), lambda b: (b, 0, 0)),        # onehot
    ]

    logits3, loss3 = pl.pallas_call(
        _bert_fwd_kernel,
        grid=(B,),
        in_specs=in_specs,
        out_specs=(
            pl.BlockSpec((1, 1, NUM_LABELS), lambda b: (b, 0, 0)),
            pl.BlockSpec((1, 1, 1), lambda b: (b, 0, 0)),
        ),
        out_shape=(
            jax.ShapeDtypeStruct((B, 1, NUM_LABELS), jnp.float32),
            jax.ShapeDtypeStruct((B, 1, 1), jnp.float32),
        ),
        compiler_params=pltpu.CompilerParams(
            dimension_semantics=("parallel",)),                       # shards batch on v7x
    )(*inputs)

    logits = logits3.reshape(B, NUM_LABELS)
    loss = jnp.mean(loss3)                                            # mean CE over batch
    return loss, logits


if __name__ == "__main__":
    key = jax.random.PRNGKey(0)
    k_par, k_txt, k_lab = jax.random.split(key, 3)

    params = init_params(k_par)

    B, S = 2, 8
    text = jax.random.randint(k_txt, (B, S), 0, VOCAB, dtype=jnp.int32)
    label = jax.random.randint(k_lab, (B,), 0, NUM_LABELS, dtype=jnp.int32)

    loss, logits = jax.jit(bert_forward)(params, text, label)
    jax.block_until_ready((loss, logits))

    assert logits.shape == (B, NUM_LABELS)
    assert loss.shape == ()
    print("KERNEL_OK")
</pallas_src>

<mosaic_0001>
module attributes {stable_mosaic.version = 11 : i64} {
  func.func @_bert_fwd_kernel(%arg0: i32, %arg1: memref<1x8x32xf32, #tpu.memory_space<vmem>>, %arg2: memref<1x32xf32, #tpu.memory_space<vmem>>, %arg3: memref<1x32xf32, #tpu.memory_space<vmem>>, %arg4: memref<2x32x96xbf16, #tpu.memory_space<vmem>>, %arg5: memref<2x1x96xf32, #tpu.memory_space<vmem>>, %arg6: memref<2x32x32xbf16, #tpu.memory_space<vmem>>, %arg7: memref<2x1x32xf32, #tpu.memory_space<vmem>>, %arg8: memref<2x1x32xf32, #tpu.memory_space<vmem>>, %arg9: memref<2x1x32xf32, #tpu.memory_space<vmem>>, %arg10: memref<2x32x64xbf16, #tpu.memory_space<vmem>>, %arg11: memref<2x1x64xf32, #tpu.memory_space<vmem>>, %arg12: memref<2x64x32xbf16, #tpu.memory_space<vmem>>, %arg13: memref<2x1x32xf32, #tpu.memory_space<vmem>>, %arg14: memref<2x1x32xf32, #tpu.memory_space<vmem>>, %arg15: memref<2x1x32xf32, #tpu.memory_space<vmem>>, %arg16: memref<32x32xbf16, #tpu.memory_space<vmem>>, %arg17: memref<1x32xf32, #tpu.memory_space<vmem>>, %arg18: memref<32x2xbf16, #tpu.memory_space<vmem>>, %arg19: memref<1x2xf32, #tpu.memory_space<vmem>>, %arg20: memref<1x1x2xf32, #tpu.memory_space<vmem>>, %arg21: memref<1x1x2xf32, #tpu.memory_space<vmem>>, %arg22: memref<1x1x1xf32, #tpu.memory_space<vmem>>) attributes {dimension_semantics = [#tpu.dimension_semantics<parallel>], iteration_bounds = array<i64: 2>, scalar_prefetch = 0 : i64, scratch_operands = 0 : i64, tpu.core_type = #tpu.core_type<tc>, window_params = [{transform_indices = @transform_0, window_bounds = array<i64: 1, 8, 32>}, {pipeline_mode = #tpu.pipeline_mode<synchronous>, transform_indices = @transform_1, window_bounds = array<i64: 1, 32>}, {pipeline_mode = #tpu.pipeline_mode<synchronous>, transform_indices = @transform_2, window_bounds = array<i64: 1, 32>}, {pipeline_mode = #tpu.pipeline_mode<synchronous>, transform_indices = @transform_3, window_bounds = array<i64: 2, 32, 96>}, {pipeline_mode = #tpu.pipeline_mode<synchronous>, transform_indices = @transform_4, window_bounds = array<i64: 2, 1, 96>}, {pipeline_mode = #tpu.pipeline_mode<synchronous>, transform_indices = @transform_5, window_bounds = array<i64: 2, 32, 32>}, {pipeline_mode = #tpu.pipeline_mode<synchronous>, transform_indices = @transform_6, window_bounds = array<i64: 2, 1, 32>}, {pipeline_mode = #tpu.pipeline_mode<synchronous>, transform_indices = @transform_7, window_bounds = array<i64: 2, 1, 32>}, {pipeline_mode = #tpu.pipeline_mode<synchronous>, transform_indices = @transform_8, window_bounds = array<i64: 2, 1, 32>}, {pipeline_mode = #tpu.pipeline_mode<synchronous>, transform_indices = @transform_9, window_bounds = array<i64: 2, 32, 64>}, {pipeline_mode = #tpu.pipeline_mode<synchronous>, transform_indices = @transform_10, window_bounds = array<i64: 2, 1, 64>}, {pipeline_mode = #tpu.pipeline_mode<synchronous>, transform_indices = @transform_11, window_bounds = array<i64: 2, 64, 32>}, {pipeline_mode = #tpu.pipeline_mode<synchronous>, transform_indices = @transform_12, window_bounds = array<i64: 2, 1, 32>}, {pipeline_mode = #tpu.pipeline_mode<synchronous>, transform_indices = @transform_13, window_bounds = array<i64: 2, 1, 32>}, {pipeline_mode = #tpu.pipeline_mode<synchronous>, transform_indices = @transform_14, window_bounds = array<i64: 2, 1, 32>}, {pipeline_mode = #tpu.pipeline_mode<synchronous>, transform_indices = @transform_15, window_bounds = array<i64: 32, 32>}, {pipeline_mode = #tpu.pipeline_mode<synchronous>, transform_indices = @transform_16, window_bounds = array<i64: 1, 32>}, {pipeline_mode = #tpu.pipeline_mode<synchronous>, transform_indices = @transform_17, window_bounds = array<i64: 32, 2>}, {pipeline_mode = #tpu.pipeline_mode<synchronous>, transform_indices = @transform_18, window_bounds = array<i64: 1, 2>}, {transform_indices = @transform_19, window_bounds = array<i64: 1, 1, 2>}, {transform_indices = @transform_20, window_bounds = array<i64: 1, 1, 2>}, {transform_indices = @transform_21, window_bounds = array<i64: 1, 1, 1>}]} {
    %c0 = arith.constant 0 : index
    %c0_0 = arith.constant 0 : index
    %c0_1 = arith.constant 0 : index
    %0 = vector.load %arg1[%c0, %c0_0, %c0_1] : memref<1x8x32xf32, #tpu.memory_space<vmem>>, vector<1x8x32xf32>
    %1 = vector.shape_cast %0 : vector<1x8x32xf32> to vector<8x32xf32>
    %c0_2 = arith.constant 0 : index
    %c0_3 = arith.constant 0 : index
    %2 = vector.load %arg2[%c0_2, %c0_3] : memref<1x32xf32, #tpu.memory_space<vmem>>, vector<1x32xf32>
    %c0_4 = arith.constant 0 : index
    %c0_5 = arith.constant 0 : index
    %3 = vector.load %arg3[%c0_4, %c0_5] : memref<1x32xf32, #tpu.memory_space<vmem>>, vector<1x32xf32>
    %cst = arith.constant dense<0.000000e+00> : vector<8xf32>
    %4 = vector.multi_reduction <add>, %1, %cst [1] : vector<8x32xf32> to vector<8xf32>
    %5 = vector.shape_cast %4 : vector<8xf32> to vector<8x1xf32>
    %cst_6 = arith.constant 3.200000e+01 : f32
    %6 = vector.broadcast %cst_6 : f32 to vector<8x1xf32>
    %7 = arith.divf %5, %6 : vector<8x1xf32>
    %8 = vector.broadcast %7 : vector<8x1xf32> to vector<8x32xf32>
    %9 = arith.subf %1, %8 : vector<8x32xf32>
    %10 = arith.mulf %9, %9 : vector<8x32xf32>
    %cst_7 = arith.constant dense<0.000000e+00> : vector<8xf32>
    %11 = vector.multi_reduction <add>, %10, %cst_7 [1] : vector<8x32xf32> to vector<8xf32>
    %12 = vector.shape_cast %11 : vector<8xf32> to vector<8x1xf32>
    %cst_8 = arith.constant 3.200000e+01 : f32
    %13 = vector.broadcast %cst_8 : f32 to vector<8x1xf32>
    %14 = arith.divf %12, %13 : vector<8x1xf32>
    %cst_9 = arith.constant 9.99999996E-13 : f32
    %15 = vector.broadcast %cst_9 : f32 to vector<8x1xf32>
    %16 = arith.addf %14, %15 : vector<8x1xf32>
    %17 = math.rsqrt %16 : vector<8x1xf32>
    %18 = vector.broadcast %17 : vector<8x1xf32> to vector<8x32xf32>
    %19 = arith.mulf %9, %18 : vector<8x32xf32>
    %20 = vector.broadcast %2 : vector<1x32xf32> to vector<8x32xf32>
    %21 = arith.mulf %19, %20 : vector<8x32xf32>
    %22 = vector.broadcast %3 : vector<1x32xf32> to vector<8x32xf32>
    %23 = arith.addf %21, %22 : vector<8x32xf32>
    %24 = arith.truncf %23 : vector<8x32xf32> to vector<8x32xbf16>
    %c0_10 = arith.constant 0 : index
    %c0_11 = arith.constant 0 : index
    %c0_12 = arith.constant 0 : index
    %25 = vector.load %arg4[%c0_10, %c0_11, %c0_12] : memref<2x32x96xbf16, #tpu.memory_space<vmem>>, vector<1x32x96xbf16>
    %26 = vector.shape_cast %25 : vector<1x32x96xbf16> to vector<32x96xbf16>
    %cst_13 = arith.constant dense<0.000000e+00> : vector<8x96xf32>
    %27 = tpu.matmul %24, %26, %cst_13 {dimension_numbers = #tpu.dot_dimension_numbers<[1], [0], [0], [1], [0, 0, 1, 1], [], []>} : vector<8x32xbf16>, vector<32x96xbf16>, vector<8x96xf32> -> vector<8x96xf32>
    %c0_14 = arith.constant 0 : index
    %c0_15 = arith.constant 0 : index
    %c0_16 = arith.constant 0 : index
    %28 = vector.load %arg5[%c0_14, %c0_15, %c0_16] : memref<2x1x96xf32, #tpu.memory_space<vmem>>, vector<1x1x96xf32>
    %29 = vector.shape_cast %28 : vector<1x1x96xf32> to vector<1x96xf32>
    %30 = vector.broadcast %29 : vector<1x96xf32> to vector<8x96xf32>
    %31 = arith.addf %27, %30 : vector<8x96xf32>
    %32 = arith.truncf %31 : vector<8x96xf32> to vector<8x96xbf16>
    %33 = vector.extract_strided_slice %32 {offsets = [0, 0], sizes = [8, 8], strides = [1, 1]} : vector<8x96xbf16> to vector<8x8xbf16>
    %34 = vector.extract_strided_slice %32 {offsets = [0, 8], sizes = [8, 8], strides = [1, 1]} : vector<8x96xbf16> to vector<8x8xbf16>
    %35 = vector.extract_strided_slice %32 {offsets = [0, 16], sizes = [8, 8], strides = [1, 1]} : vector<8x96xbf16> to vector<8x8xbf16>
    %36 = vector.extract_strided_slice %32 {offsets = [0, 24], sizes = [8, 8], strides = [1, 1]} : vector<8x96xbf16> to vector<8x8xbf16>
    %37 = vector.shape_cast %33 : vector<8x8xbf16> to vector<1x8x8xbf16>
    %38 = vector.shape_cast %34 : vector<8x8xbf16> to vector<1x8x8xbf16>
    %39 = vector.shape_cast %35 : vector<8x8xbf16> to vector<1x8x8xbf16>
    %40 = vector.shape_cast %36 : vector<8x8xbf16> to vector<1x8x8xbf16>
    %41 = tpu.concatenate %37, %38, %39, %40 in 0 : vector<1x8x8xbf16>, vector<1x8x8xbf16>, vector<1x8x8xbf16>, vector<1x8x8xbf16> -> vector<4x8x8xbf16>
    %42 = vector.extract_strided_slice %32 {offsets = [0, 32], sizes = [8, 8], strides = [1, 1]} : vector<8x96xbf16> to vector<8x8xbf16>
    %43 = vector.extract_strided_slice %32 {offsets = [0, 40], sizes = [8, 8], strides = [1, 1]} : vector<8x96xbf16> to vector<8x8xbf16>
    %44 = vector.extract_strided_slice %32 {offsets = [0, 48], sizes = [8, 8], strides = [1, 1]} : vector<8x96xbf16> to vector<8x8xbf16>
    %45 = vector.extract_strided_slice %32 {offsets = [0, 56], sizes = [8, 8], strides = [1, 1]} : vector<8x96xbf16> to vector<8x8xbf16>
    %46 = vector.shape_cast %42 : vector<8x8xbf16> to vector<1x8x8xbf16>
    %47 = vector.shape_cast %43 : vector<8x8xbf16> to vector<1x8x8xbf16>
    %48 = vector.shape_cast %44 : vector<8x8xbf16> to vector<1x8x8xbf16>
    %49 = vector.shape_cast %45 : vector<8x8xbf16> to vector<1x8x8xbf16>
    %50 = tpu.concatenate %46, %47, %48, %49 in 0 : vector<1x8x8xbf16>, vector<1x8x8xbf16>, vector<1x8x8xbf16>, vector<1x8x8xbf16> -> vector<4x8x8xbf16>
    %51 = vector.extract_strided_slice %32 {offsets = [0, 64], sizes = [8, 8], strides = [1, 1]} : vector<8x96xbf16> to vector<8x8xbf16>
    %52 = vector.extract_strided_slice %32 {offsets = [0, 72], sizes = [8, 8], strides = [1, 1]} : vector<8x96xbf16> to vector<8x8xbf16>
    %53 = vector.extract_strided_slice %32 {offsets = [0, 80], sizes = [8, 8], strides = [1, 1]} : vector<8x96xbf16> to vector<8x8xbf16>
    %54 = vector.extract_strided_slice %32 {offsets = [0, 88], sizes = [8, 8], strides = [1, 1]} : vector<8x96xbf16> to vector<8x8xbf16>
    %55 = vector.shape_cast %51 : vector<8x8xbf16> to vector<1x8x8xbf16>
    %56 = vector.shape_cast %52 : vector<8x8xbf16> to vector<1x8x8xbf16>
    %57 = vector.shape_cast %53 : vector<8x8xbf16> to vector<1x8x8xbf16>
    %58 = vector.shape_cast %54 : vector<8x8xbf16> to vector<1x8x8xbf16>
    %59 = tpu.concatenate %55, %56, %57, %58 in 0 : vector<1x8x8xbf16>, vector<1x8x8xbf16>, vector<1x8x8xbf16>, vector<1x8x8xbf16> -> vector<4x8x8xbf16>
    "tpu.trace_start"() <{level = 10 : i32, message = "hqd,hkd->hqk"}> : () -> ()
    %cst_17 = arith.constant dense<0.000000e+00> : vector<4x8x8xf32>
    %60 = tpu.matmul %41, %50, %cst_17 {dimension_numbers = #tpu.dot_dimension_numbers<[2], [2], [1], [1], [0, 0, 0, 1, 1, 1], [0], [0]>} : vector<4x8x8xbf16>, vector<4x8x8xbf16>, vector<4x8x8xf32> -> vector<4x8x8xf32>
    "tpu.trace_stop"() : () -> ()
    %cst_18 = arith.constant dense<0xFF800000> : vector<4x8xf32>
    %61 = vector.multi_reduction <maximumf>, %60, %cst_18 [2] : vector<4x8x8xf32> to vector<4x8xf32>
    %62 = vector.shape_cast %61 : vector<4x8xf32> to vector<4x8x1xf32>
    %63 = vector.broadcast %62 : vector<4x8x1xf32> to vector<4x8x8xf32>
    %64 = arith.subf %60, %63 : vector<4x8x8xf32>
    %65 = math.exp %64 : vector<4x8x8xf32>
    %cst_19 = arith.constant dense<0.000000e+00> : vector<4x8xf32>
    %66 = vector.multi_reduction <add>, %65, %cst_19 [2] : vector<4x8x8xf32> to vector<4x8xf32>
    %67 = vector.shape_cast %66 : vector<4x8xf32> to vector<4x8x1xf32>
    %68 = tpu.reciprocal %67 {approx = true} : vector<4x8x1xf32> -> vector<4x8x1xf32>
    %69 = vector.broadcast %68 : vector<4x8x1xf32> to vector<4x8x8xf32>
    %70 = arith.mulf %65, %69 : vector<4x8x8xf32>
    %71 = arith.truncf %70 : vector<4x8x8xf32> to vector<4x8x8xbf16>
    "tpu.trace_start"() <{level = 10 : i32, message = "hqk,hkd->hqd"}> : () -> ()
    %cst_20 = arith.constant dense<0.000000e+00> : vector<4x8x8xf32>
    %72 = tpu.matmul %71, %59, %cst_20 {dimension_numbers = #tpu.dot_dimension_numbers<[2], [1], [1], [2], [0, 0, 0, 1, 1, 2], [0], [0]>} : vector<4x8x8xbf16>, vector<4x8x8xbf16>, vector<4x8x8xf32> -> vector<4x8x8xf32>
    "tpu.trace_stop"() : () -> ()
    %73 = vector.extract_strided_slice %72 {offsets = [0, 0, 0], sizes = [1, 8, 8], strides = [1, 1, 1]} : vector<4x8x8xf32> to vector<1x8x8xf32>
    %74 = vector.shape_cast %73 : vector<1x8x8xf32> to vector<8x8xf32>
    %75 = vector.extract_strided_slice %72 {offsets = [1, 0, 0], sizes = [1, 8, 8], strides = [1, 1, 1]} : vector<4x8x8xf32> to vector<1x8x8xf32>
    %76 = vector.shape_cast %75 : vector<1x8x8xf32> to vector<8x8xf32>
    %77 = vector.extract_strided_slice %72 {offsets = [2, 0, 0], sizes = [1, 8, 8], strides = [1, 1, 1]} : vector<4x8x8xf32> to vector<1x8x8xf32>
    %78 = vector.shape_cast %77 : vector<1x8x8xf32> to vector<8x8xf32>
    %79 = vector.extract_strided_slice %72 {offsets = [3, 0, 0], sizes = [1, 8, 8], strides = [1, 1, 1]} : vector<4x8x8xf32> to vector<1x8x8xf32>
    %80 = vector.shape_cast %79 : vector<1x8x8xf32> to vector<8x8xf32>
    %81 = tpu.concatenate %74, %76, %78, %80 in 1 : vector<8x8xf32>, vector<8x8xf32>, vector<8x8xf32>, vector<8x8xf32> -> vector<8x32xf32>
    %82 = arith.truncf %81 : vector<8x32xf32> to vector<8x32xbf16>
    %c0_21 = arith.constant 0 : index
    %c0_22 = arith.constant 0 : index
    %c0_23 = arith.constant 0 : index
    %83 = vector.load %arg6[%c0_21, %c0_22, %c0_23] : memref<2x32x32xbf16, #tpu.memory_space<vmem>>, vector<1x32x32xbf16>
    %84 = vector.shape_cast %83 : vector<1x32x32xbf16> to vector<32x32xbf16>
    %cst_24 = arith.constant dense<0.000000e+00> : vector<8x32xf32>
    %85 = tpu.matmul %82, %84, %cst_24 {dimension_numbers = #tpu.dot_dimension_numbers<[1], [0], [0], [1], [0, 0, 1, 1], [], []>} : vector<8x32xbf16>, vector<32x32xbf16>, vector<8x32xf32> -> vector<8x32xf32>
    %c0_25 = arith.constant 0 : index
    %c0_26 = arith.constant 0 : index
    %c0_27 = arith.constant 0 : index
    %86 = vector.load %arg7[%c0_25, %c0_26, %c0_27] : memref<2x1x32xf32, #tpu.memory_space<vmem>>, vector<1x1x32xf32>
    %87 = vector.shape_cast %86 : vector<1x1x32xf32> to vector<1x32xf32>
    %88 = vector.broadcast %87 : vector<1x32xf32> to vector<8x32xf32>
    %89 = arith.addf %85, %88 : vector<8x32xf32>
    %90 = arith.addf %23, %89 : vector<8x32xf32>
    %c0_28 = arith.constant 0 : index
    %c0_29 = arith.constant 0 : index
    %c0_30 = arith.constant 0 : index
    %91 = vector.load %arg8[%c0_28, %c0_29, %c0_30] : memref<2x1x32xf32, #tpu.memory_space<vmem>>, vector<1x1x32xf32>
    %92 = vector.shape_cast %91 : vector<1x1x32xf32> to vector<1x32xf32>
    %c0_31 = arith.constant 0 : index
    %c0_32 = arith.constant 0 : index
    %c0_33 = arith.constant 0 : index
    %93 = vector.load %arg9[%c0_31, %c0_32, %c0_33] : memref<2x1x32xf32, #tpu.memory_space<vmem>>, vector<1x1x32xf32>
    %94 = vector.shape_cast %93 : vector<1x1x32xf32> to vector<1x32xf32>
    %cst_34 = arith.constant dense<0.000000e+00> : vector<8xf32>
    %95 = vector.multi_reduction <add>, %90, %cst_34 [1] : vector<8x32xf32> to vector<8xf32>
    %96 = vector.shape_cast %95 : vector<8xf32> to vector<8x1xf32>
    %cst_35 = arith.constant 3.200000e+01 : f32
    %97 = vector.broadcast %cst_35 : f32 to vector<8x1xf32>
    %98 = arith.divf %96, %97 : vector<8x1xf32>
    %99 = vector.broadcast %98 : vector<8x1xf32> to vector<8x32xf32>
    %100 = arith.subf %90, %99 : vector<8x32xf32>
    %101 = arith.mulf %100, %100 : vector<8x32xf32>
    %cst_36 = arith.constant dense<0.000000e+00> : vector<8xf32>
    %102 = vector.multi_reduction <add>, %101, %cst_36 [1] : vector<8x32xf32> to vector<8xf32>
    %103 = vector.shape_cast %102 : vector<8xf32> to vector<8x1xf32>
    %cst_37 = arith.constant 3.200000e+01 : f32
    %104 = vector.broadcast %cst_37 : f32 to vector<8x1xf32>
    %105 = arith.divf %103, %104 : vector<8x1xf32>
    %cst_38 = arith.constant 9.99999996E-13 : f32
    %106 = vector.broadcast %cst_38 : f32 to vector<8x1xf32>
    %107 = arith.addf %105, %106 : vector<8x1xf32>
    %108 = math.rsqrt %107 : vector<8x1xf32>
    %109 = vector.broadcast %108 : vector<8x1xf32> to vector<8x32xf32>
    %110 = arith.mulf %100, %109 : vector<8x32xf32>
    %111 = vector.broadcast %92 : vector<1x32xf32> to vector<8x32xf32>
    %112 = arith.mulf %110, %111 : vector<8x32xf32>
    %113 = vector.broadcast %94 : vector<1x32xf32> to vector<8x32xf32>
    %114 = arith.addf %112, %113 : vector<8x32xf32>
    %115 = arith.truncf %114 : vector<8x32xf32> to vector<8x32xbf16>
    %c0_39 = arith.constant 0 : index
    %c0_40 = arith.constant 0 : index
    %c0_41 = arith.constant 0 : index
    %116 = vector.load %arg10[%c0_39, %c0_40, %c0_41] : memref<2x32x64xbf16, #tpu.memory_space<vmem>>, vector<1x32x64xbf16>
    %117 = vector.shape_cast %116 : vector<1x32x64xbf16> to vector<32x64xbf16>
    %cst_42 = arith.constant dense<0.000000e+00> : vector<8x64xf32>
    %118 = tpu.matmul %115, %117, %cst_42 {dimension_numbers = #tpu.dot_dimension_numbers<[1], [0], [0], [1], [0, 0, 1, 1], [], []>} : vector<8x32xbf16>, vector<32x64xbf16>, vector<8x64xf32> -> vector<8x64xf32>
    %c0_43 = arith.constant 0 : index
    %c0_44 = arith.constant 0 : index
    %c0_45 = arith.constant 0 : index
    %119 = vector.load %arg11[%c0_43, %c0_44, %c0_45] : memref<2x1x64xf32, #tpu.memory_space<vmem>>, vector<1x1x64xf32>
    %120 = vector.shape_cast %119 : vector<1x1x64xf32> to vector<1x64xf32>
    %121 = vector.broadcast %120 : vector<1x64xf32> to vector<8x64xf32>
    %122 = arith.addf %118, %121 : vector<8x64xf32>
    %cst_46 = arith.constant 5.000000e-01 : f32
    %123 = vector.broadcast %cst_46 : f32 to vector<8x64xf32>
    %124 = arith.mulf %123, %122 : vector<8x64xf32>
    %cst_47 = arith.constant 4.471500e-02 : f32
    %125 = vector.broadcast %cst_47 : f32 to vector<8x64xf32>
    %126 = arith.mulf %125, %122 : vector<8x64xf32>
    %127 = arith.mulf %126, %122 : vector<8x64xf32>
    %128 = arith.mulf %127, %122 : vector<8x64xf32>
    %129 = arith.addf %122, %128 : vector<8x64xf32>
    %cst_48 = arith.constant 0.797884583 : f32
    %130 = vector.broadcast %cst_48 : f32 to vector<8x64xf32>
    %131 = arith.mulf %130, %129 : vector<8x64xf32>
    %132 = math.tanh %131 : vector<8x64xf32>
    %cst_49 = arith.constant 1.000000e+00 : f32
    %133 = vector.broadcast %cst_49 : f32 to vector<8x64xf32>
    %134 = arith.addf %133, %132 : vector<8x64xf32>
    %135 = arith.mulf %124, %134 : vector<8x64xf32>
    %136 = arith.truncf %135 : vector<8x64xf32> to vector<8x64xbf16>
    %c0_50 = arith.constant 0 : index
    %c0_51 = arith.constant 0 : index
    %c0_52 = arith.constant 0 : index
    %137 = vector.load %arg12[%c0_50, %c0_51, %c0_52] : memref<2x64x32xbf16, #tpu.memory_space<vmem>>, vector<1x64x32xbf16>
    %138 = vector.shape_cast %137 : vector<1x64x32xbf16> to vector<64x32xbf16>
    %cst_53 = arith.constant dense<0.000000e+00> : vector<8x32xf32>
    %139 = tpu.matmul %136, %138, %cst_53 {dimension_numbers = #tpu.dot_dimension_numbers<[1], [0], [0], [1], [0, 0, 1, 1], [], []>} : vector<8x64xbf16>, vector<64x32xbf16>, vector<8x32xf32> -> vector<8x32xf32>
    %c0_54 = arith.constant 0 : index
    %c0_55 = arith.constant 0 : index
    %c0_56 = arith.constant 0 : index
    %140 = vector.load %arg13[%c0_54, %c0_55, %c0_56] : memref<2x1x32xf32, #tpu.memory_space<vmem>>, vector<1x1x32xf32>
    %141 = vector.shape_cast %140 : vector<1x1x32xf32> to vector<1x32xf32>
    %142 = vector.broadcast %141 : vector<1x32xf32> to vector<8x32xf32>
    %143 = arith.addf %139, %142 : vector<8x32xf32>
    %144 = arith.addf %114, %143 : vector<8x32xf32>
    %c0_57 = arith.constant 0 : index
    %c0_58 = arith.constant 0 : index
    %c0_59 = arith.constant 0 : index
    %145 = vector.load %arg14[%c0_57, %c0_58, %c0_59] : memref<2x1x32xf32, #tpu.memory_space<vmem>>, vector<1x1x32xf32>
    %146 = vector.shape_cast %145 : vector<1x1x32xf32> to vector<1x32xf32>
    %c0_60 = arith.constant 0 : index
    %c0_61 = arith.constant 0 : index
    %c0_62 = arith.constant 0 : index
    %147 = vector.load %arg15[%c0_60, %c0_61, %c0_62] : memref<2x1x32xf32, #tpu.memory_space<vmem>>, vector<1x1x32xf32>
    %148 = vector.shape_cast %147 : vector<1x1x32xf32> to vector<1x32xf32>
    %cst_63 = arith.constant dense<0.000000e+00> : vector<8xf32>
    %149 = vector.multi_reduction <add>, %144, %cst_63 [1] : vector<8x32xf32> to vector<8xf32>
    %150 = vector.shape_cast %149 : vector<8xf32> to vector<8x1xf32>
    %cst_64 = arith.constant 3.200000e+01 : f32
    %151 = vector.broadcast %cst_64 : f32 to vector<8x1xf32>
    %152 = arith.divf %150, %151 : vector<8x1xf32>
    %153 = vector.broadcast %152 : vector<8x1xf32> to vector<8x32xf32>
    %154 = arith.subf %144, %153 : vector<8x32xf32>
    %155 = arith.mulf %154, %154 : vector<8x32xf32>
    %cst_65 = arith.constant dense<0.000000e+00> : vector<8xf32>
    %156 = vector.multi_reduction <add>, %155, %cst_65 [1] : vector<8x32xf32> to vector<8xf32>
    %157 = vector.shape_cast %156 : vector<8xf32> to vector<8x1xf32>
    %cst_66 = arith.constant 3.200000e+01 : f32
    %158 = vector.broadcast %cst_66 : f32 to vector<8x1xf32>
    %159 = arith.divf %157, %158 : vector<8x1xf32>
    %cst_67 = arith.constant 9.99999996E-13 : f32
    %160 = vector.broadcast %cst_67 : f32 to vector<8x1xf32>
    %161 = arith.addf %159, %160 : vector<8x1xf32>
    %162 = math.rsqrt %161 : vector<8x1xf32>
    %163 = vector.broadcast %162 : vector<8x1xf32> to vector<8x32xf32>
    %164 = arith.mulf %154, %163 : vector<8x32xf32>
    %165 = vector.broadcast %146 : vector<1x32xf32> to vector<8x32xf32>
    %166 = arith.mulf %164, %165 : vector<8x32xf32>
    %167 = vector.broadcast %148 : vector<1x32xf32> to vector<8x32xf32>
    %168 = arith.addf %166, %167 : vector<8x32xf32>
    %169 = arith.truncf %168 : vector<8x32xf32> to vector<8x32xbf16>
    %c1 = arith.constant 1 : index
    %c0_68 = arith.constant 0 : index
    %c0_69 = arith.constant 0 : index
    %170 = vector.load %arg4[%c1, %c0_68, %c0_69] : memref<2x32x96xbf16, #tpu.memory_space<vmem>>, vector<1x32x96xbf16>
    %171 = vector.shape_cast %170 : vector<1x32x96xbf16> to vector<32x96xbf16>
    %cst_70 = arith.constant dense<0.000000e+00> : vector<8x96xf32>
    %172 = tpu.matmul %169, %171, %cst_70 {dimension_numbers = #tpu.dot_dimension_numbers<[1], [0], [0], [1], [0, 0, 1, 1], [], []>} : vector<8x32xbf16>, vector<32x96xbf16>, vector<8x96xf32> -> vector<8x96xf32>
    %c1_71 = arith.constant 1 : index
    %c0_72 = arith.constant 0 : index
    %c0_73 = arith.constant 0 : index
    %173 = vector.load %arg5[%c1_71, %c0_72, %c0_73] : memref<2x1x96xf32, #tpu.memory_space<vmem>>, vector<1x1x96xf32>
    %174 = vector.shape_cast %173 : vector<1x1x96xf32> to vector<1x96xf32>
    %175 = vector.broadcast %174 : vector<1x96xf32> to vector<8x96xf32>
    %176 = arith.addf %172, %175 : vector<8x96xf32>
    %177 = arith.truncf %176 : vector<8x96xf32> to vector<8x96xbf16>
    %178 = vector.extract_strided_slice %177 {offsets = [0, 0], sizes = [8, 8], strides = [1, 1]} : vector<8x96xbf16> to vector<8x8xbf16>
    %179 = vector.extract_strided_slice %177 {offsets = [0, 8], sizes = [8, 8], strides = [1, 1]} : vector<8x96xbf16> to vector<8x8xbf16>
    %180 = vector.extract_strided_slice %177 {offsets = [0, 16], sizes = [8, 8], strides = [1, 1]} : vector<8x96xbf16> to vector<8x8xbf16>
    %181 = vector.extract_strided_slice %177 {offsets = [0, 24], sizes = [8, 8], strides = [1, 1]} : vector<8x96xbf16> to vector<8x8xbf16>
    %182 = vector.shape_cast %178 : vector<8x8xbf16> to vector<1x8x8xbf16>
    %183 = vector.shape_cast %179 : vector<8x8xbf16> to vector<1x8x8xbf16>
    %184 = vector.shape_cast %180 : vector<8x8xbf16> to vector<1x8x8xbf16>
    %185 = vector.shape_cast %181 : vector<8x8xbf16> to vector<1x8x8xbf16>
    %186 = tpu.concatenate %182, %183, %184, %185 in 0 : vector<1x8x8xbf16>, vector<1x8x8xbf16>, vector<1x8x8xbf16>, vector<1x8x8xbf16> -> vector<4x8x8xbf16>
    %187 = vector.extract_strided_slice %177 {offsets = [0, 32], sizes = [8, 8], strides = [1, 1]} : vector<8x96xbf16> to vector<8x8xbf16>
    %188 = vector.extract_strided_slice %177 {offsets = [0, 40], sizes = [8, 8], strides = [1, 1]} : vector<8x96xbf16> to vector<8x8xbf16>
    %189 = vector.extract_strided_slice %177 {offsets = [0, 48], sizes = [8, 8], strides = [1, 1]} : vector<8x96xbf16> to vector<8x8xbf16>
    %190 = vector.extract_strided_slice %177 {offsets = [0, 56], sizes = [8, 8], strides = [1, 1]} : vector<8x96xbf16> to vector<8x8xbf16>
    %191 = vector.shape_cast %187 : vector<8x8xbf16> to vector<1x8x8xbf16>
    %192 = vector.shape_cast %188 : vector<8x8xbf16> to vector<1x8x8xbf16>
    %193 = vector.shape_cast %189 : vector<8x8xbf16> to vector<1x8x8xbf16>
    %194 = vector.shape_cast %190 : vector<8x8xbf16> to vector<1x8x8xbf16>
    %195 = tpu.concatenate %191, %192, %193, %194 in 0 : vector<1x8x8xbf16>, vector<1x8x8xbf16>, vector<1x8x8xbf16>, vector<1x8x8xbf16> -> vector<4x8x8xbf16>
    %196 = vector.extract_strided_slice %177 {offsets = [0, 64], sizes = [8, 8], strides = [1, 1]} : vector<8x96xbf16> to vector<8x8xbf16>
    %197 = vector.extract_strided_slice %177 {offsets = [0, 72], sizes = [8, 8], strides = [1, 1]} : vector<8x96xbf16> to vector<8x8xbf16>
    %198 = vector.extract_strided_slice %177 {offsets = [0, 80], sizes = [8, 8], strides = [1, 1]} : vector<8x96xbf16> to vector<8x8xbf16>
    %199 = vector.extract_strided_slice %177 {offsets = [0, 88], sizes = [8, 8], strides = [1, 1]} : vector<8x96xbf16> to vector<8x8xbf16>
    %200 = vector.shape_cast %196 : vector<8x8xbf16> to vector<1x8x8xbf16>
    %201 = vector.shape_cast %197 : vector<8x8xbf16> to vector<1x8x8xbf16>
    %202 = vector.shape_cast %198 : vector<8x8xbf16> to vector<1x8x8xbf16>
    %203 = vector.shape_cast %199 : vector<8x8xbf16> to vector<1x8x8xbf16>
    %204 = tpu.concatenate %200, %201, %202, %203 in 0 : vector<1x8x8xbf16>, vector<1x8x8xbf16>, vector<1x8x8xbf16>, vector<1x8x8xbf16> -> vector<4x8x8xbf16>
    "tpu.trace_start"() <{level = 10 : i32, message = "hqd,hkd->hqk"}> : () -> ()
    %cst_74 = arith.constant dense<0.000000e+00> : vector<4x8x8xf32>
    %205 = tpu.matmul %186, %195, %cst_74 {dimension_numbers = #tpu.dot_dimension_numbers<[2], [2], [1], [1], [0, 0, 0, 1, 1, 1], [0], [0]>} : vector<4x8x8xbf16>, vector<4x8x8xbf16>, vector<4x8x8xf32> -> vector<4x8x8xf32>
    "tpu.trace_stop"() : () -> ()
    %cst_75 = arith.constant dense<0xFF800000> : vector<4x8xf32>
    %206 = vector.multi_reduction <maximumf>, %205, %cst_75 [2] : vector<4x8x8xf32> to vector<4x8xf32>
    %207 = vector.shape_cast %206 : vector<4x8xf32> to vector<4x8x1xf32>
    %208 = vector.broadcast %207 : vector<4x8x1xf32> to vector<4x8x8xf32>
    %209 = arith.subf %205, %208 : vector<4x8x8xf32>
    %210 = math.exp %209 : vector<4x8x8xf32>
    %cst_76 = arith.constant dense<0.000000e+00> : vector<4x8xf32>
    %211 = vector.multi_reduction <add>, %210, %cst_76 [2] : vector<4x8x8xf32> to vector<4x8xf32>
    %212 = vector.shape_cast %211 : vector<4x8xf32> to vector<4x8x1xf32>
    %213 = tpu.reciprocal %212 {approx = true} : vector<4x8x1xf32> -> vector<4x8x1xf32>
    %214 = vector.broadcast %213 : vector<4x8x1xf32> to vector<4x8x8xf32>
    %215 = arith.mulf %210, %214 : vector<4x8x8xf32>
    %216 = arith.truncf %215 : vector<4x8x8xf32> to vector<4x8x8xbf16>
    "tpu.trace_start"() <{level = 10 : i32, message = "hqk,hkd->hqd"}> : () -> ()
    %cst_77 = arith.constant dense<0.000000e+00> : vector<4x8x8xf32>
    %217 = tpu.matmul %216, %204, %cst_77 {dimension_numbers = #tpu.dot_dimension_numbers<[2], [1], [1], [2], [0, 0, 0, 1, 1, 2], [0], [0]>} : vector<4x8x8xbf16>, vector<4x8x8xbf16>, vector<4x8x8xf32> -> vector<4x8x8xf32>
    "tpu.trace_stop"() : () -> ()
    %218 = vector.extract_strided_slice %217 {offsets = [0, 0, 0], sizes = [1, 8, 8], strides = [1, 1, 1]} : vector<4x8x8xf32> to vector<1x8x8xf32>
    %219 = vector.shape_cast %218 : vector<1x8x8xf32> to vector<8x8xf32>
    %220 = vector.extract_strided_slice %217 {offsets = [1, 0, 0], sizes = [1, 8, 8], strides = [1, 1, 1]} : vector<4x8x8xf32> to vector<1x8x8xf32>
    %221 = vector.shape_cast %220 : vector<1x8x8xf32> to vector<8x8xf32>
    %222 = vector.extract_strided_slice %217 {offsets = [2, 0, 0], sizes = [1, 8, 8], strides = [1, 1, 1]} : vector<4x8x8xf32> to vector<1x8x8xf32>
    %223 = vector.shape_cast %222 : vector<1x8x8xf32> to vector<8x8xf32>
    %224 = vector.extract_strided_slice %217 {offsets = [3, 0, 0], sizes = [1, 8, 8], strides = [1, 1, 1]} : vector<4x8x8xf32> to vector<1x8x8xf32>
    %225 = vector.shape_cast %224 : vector<1x8x8xf32> to vector<8x8xf32>
    %226 = tpu.concatenate %219, %221, %223, %225 in 1 : vector<8x8xf32>, vector<8x8xf32>, vector<8x8xf32>, vector<8x8xf32> -> vector<8x32xf32>
    %227 = arith.truncf %226 : vector<8x32xf32> to vector<8x32xbf16>
    %c1_78 = arith.constant 1 : index
    %c0_79 = arith.constant 0 : index
    %c0_80 = arith.constant 0 : index
    %228 = vector.load %arg6[%c1_78, %c0_79, %c0_80] : memref<2x32x32xbf16, #tpu.memory_space<vmem>>, vector<1x32x32xbf16>
    %229 = vector.shape_cast %228 : vector<1x32x32xbf16> to vector<32x32xbf16>
    %cst_81 = arith.constant dense<0.000000e+00> : vector<8x32xf32>
    %230 = tpu.matmul %227, %229, %cst_81 {dimension_numbers = #tpu.dot_dimension_numbers<[1], [0], [0], [1], [0, 0, 1, 1], [], []>} : vector<8x32xbf16>, vector<32x32xbf16>, vector<8x32xf32> -> vector<8x32xf32>
    %c1_82 = arith.constant 1 : index
    %c0_83 = arith.constant 0 : index
    %c0_84 = arith.constant 0 : index
    %231 = vector.load %arg7[%c1_82, %c0_83, %c0_84] : memref<2x1x32xf32, #tpu.memory_space<vmem>>, vector<1x1x32xf32>
    %232 = vector.shape_cast %231 : vector<1x1x32xf32> to vector<1x32xf32>
    %233 = vector.broadcast %232 : vector<1x32xf32> to vector<8x32xf32>
    %234 = arith.addf %230, %233 : vector<8x32xf32>
    %235 = arith.addf %168, %234 : vector<8x32xf32>
    %c1_85 = arith.constant 1 : index
    %c0_86 = arith.constant 0 : index
    %c0_87 = arith.constant 0 : index
    %236 = vector.load %arg8[%c1_85, %c0_86, %c0_87] : memref<2x1x32xf32, #tpu.memory_space<vmem>>, vector<1x1x32xf32>
    %237 = vector.shape_cast %236 : vector<1x1x32xf32> to vector<1x32xf32>
    %c1_88 = arith.constant 1 : index
    %c0_89 = arith.constant 0 : index
    %c0_90 = arith.constant 0 : index
    %238 = vector.load %arg9[%c1_88, %c0_89, %c0_90] : memref<2x1x32xf32, #tpu.memory_space<vmem>>, vector<1x1x32xf32>
    %239 = vector.shape_cast %238 : vector<1x1x32xf32> to vector<1x32xf32>
    %cst_91 = arith.constant dense<0.000000e+00> : vector<8xf32>
    %240 = vector.multi_reduction <add>, %235, %cst_91 [1] : vector<8x32xf32> to vector<8xf32>
    %241 = vector.shape_cast %240 : vector<8xf32> to vector<8x1xf32>
    %cst_92 = arith.constant 3.200000e+01 : f32
    %242 = vector.broadcast %cst_92 : f32 to vector<8x1xf32>
    %243 = arith.divf %241, %242 : vector<8x1xf32>
    %244 = vector.broadcast %243 : vector<8x1xf32> to vector<8x32xf32>
    %245 = arith.subf %235, %244 : vector<8x32xf32>
    %246 = arith.mulf %245, %245 : vector<8x32xf32>
    %cst_93 = arith.constant dense<0.000000e+00> : vector<8xf32>
    %247 = vector.multi_reduction <add>, %246, %cst_93 [1] : vector<8x32xf32> to vector<8xf32>
    %248 = vector.shape_cast %247 : vector<8xf32> to vector<8x1xf32>
    %cst_94 = arith.constant 3.200000e+01 : f32
    %249 = vector.broadcast %cst_94 : f32 to vector<8x1xf32>
    %250 = arith.divf %248, %249 : vector<8x1xf32>
    %cst_95 = arith.constant 9.99999996E-13 : f32
    %251 = vector.broadcast %cst_95 : f32 to vector<8x1xf32>
    %252 = arith.addf %250, %251 : vector<8x1xf32>
    %253 = math.rsqrt %252 : vector<8x1xf32>
    %254 = vector.broadcast %253 : vector<8x1xf32> to vector<8x32xf32>
    %255 = arith.mulf %245, %254 : vector<8x32xf32>
    %256 = vector.broadcast %237 : vector<1x32xf32> to vector<8x32xf32>
    %257 = arith.mulf %255, %256 : vector<8x32xf32>
    %258 = vector.broadcast %239 : vector<1x32xf32> to vector<8x32xf32>
    %259 = arith.addf %257, %258 : vector<8x32xf32>
    %260 = arith.truncf %259 : vector<8x32xf32> to vector<8x32xbf16>
    %c1_96 = arith.constant 1 : index
    %c0_97 = arith.constant 0 : index
    %c0_98 = arith.constant 0 : index
    %261 = vector.load %arg10[%c1_96, %c0_97, %c0_98] : memref<2x32x64xbf16, #tpu.memory_space<vmem>>, vector<1x32x64xbf16>
    %262 = vector.shape_cast %261 : vector<1x32x64xbf16> to vector<32x64xbf16>
    %cst_99 = arith.constant dense<0.000000e+00> : vector<8x64xf32>
    %263 = tpu.matmul %260, %262, %cst_99 {dimension_numbers = #tpu.dot_dimension_numbers<[1], [0], [0], [1], [0, 0, 1, 1], [], []>} : vector<8x32xbf16>, vector<32x64xbf16>, vector<8x64xf32> -> vector<8x64xf32>
    %c1_100 = arith.constant 1 : index
    %c0_101 = arith.constant 0 : index
    %c0_102 = arith.constant 0 : index
    %264 = vector.load %arg11[%c1_100, %c0_101, %c0_102] : memref<2x1x64xf32, #tpu.memory_space<vmem>>, vector<1x1x64xf32>
    %265 = vector.shape_cast %264 : vector<1x1x64xf32> to vector<1x64xf32>
    %266 = vector.broadcast %265 : vector<1x64xf32> to vector<8x64xf32>
    %267 = arith.addf %263, %266 : vector<8x64xf32>
    %cst_103 = arith.constant 5.000000e-01 : f32
    %268 = vector.broadcast %cst_103 : f32 to vector<8x64xf32>
    %269 = arith.mulf %268, %267 : vector<8x64xf32>
    %cst_104 = arith.constant 4.471500e-02 : f32
    %270 = vector.broadcast %cst_104 : f32 to vector<8x64xf32>
    %271 = arith.mulf %270, %267 : vector<8x64xf32>
    %272 = arith.mulf %271, %267 : vector<8x64xf32>
    %273 = arith.mulf %272, %267 : vector<8x64xf32>
    %274 = arith.addf %267, %273 : vector<8x64xf32>
    %cst_105 = arith.constant 0.797884583 : f32
    %275 = vector.broadcast %cst_105 : f32 to vector<8x64xf32>
    %276 = arith.mulf %275, %274 : vector<8x64xf32>
    %277 = math.tanh %276 : vector<8x64xf32>
    %cst_106 = arith.constant 1.000000e+00 : f32
    %278 = vector.broadcast %cst_106 : f32 to vector<8x64xf32>
    %279 = arith.addf %278, %277 : vector<8x64xf32>
    %280 = arith.mulf %269, %279 : vector<8x64xf32>
    %281 = arith.truncf %280 : vector<8x64xf32> to vector<8x64xbf16>
    %c1_107 = arith.constant 1 : index
    %c0_108 = arith.constant 0 : index
    %c0_109 = arith.constant 0 : index
    %282 = vector.load %arg12[%c1_107, %c0_108, %c0_109] : memref<2x64x32xbf16, #tpu.memory_space<vmem>>, vector<1x64x32xbf16>
    %283 = vector.shape_cast %282 : vector<1x64x32xbf16> to vector<64x32xbf16>
    %cst_110 = arith.constant dense<0.000000e+00> : vector<8x32xf32>
    %284 = tpu.matmul %281, %283, %cst_110 {dimension_numbers = #tpu.dot_dimension_numbers<[1], [0], [0], [1], [0, 0, 1, 1], [], []>} : vector<8x64xbf16>, vector<64x32xbf16>, vector<8x32xf32> -> vector<8x32xf32>
    %c1_111 = arith.constant 1 : index
    %c0_112 = arith.constant 0 : index
    %c0_113 = arith.constant 0 : index
    %285 = vector.load %arg13[%c1_111, %c0_112, %c0_113] : memref<2x1x32xf32, #tpu.memory_space<vmem>>, vector<1x1x32xf32>
    %286 = vector.shape_cast %285 : vector<1x1x32xf32> to vector<1x32xf32>
    %287 = vector.broadcast %286 : vector<1x32xf32> to vector<8x32xf32>
    %288 = arith.addf %284, %287 : vector<8x32xf32>
    %289 = arith.addf %259, %288 : vector<8x32xf32>
    %c1_114 = arith.constant 1 : index
    %c0_115 = arith.constant 0 : index
    %c0_116 = arith.constant 0 : index
    %290 = vector.load %arg14[%c1_114, %c0_115, %c0_116] : memref<2x1x32xf32, #tpu.memory_space<vmem>>, vector<1x1x32xf32>
    %291 = vector.shape_cast %290 : vector<1x1x32xf32> to vector<1x32xf32>
    %c1_117 = arith.constant 1 : index
    %c0_118 = arith.constant 0 : index
    %c0_119 = arith.constant 0 : index
    %292 = vector.load %arg15[%c1_117, %c0_118, %c0_119] : memref<2x1x32xf32, #tpu.memory_space<vmem>>, vector<1x1x32xf32>
    %293 = vector.shape_cast %292 : vector<1x1x32xf32> to vector<1x32xf32>
    %cst_120 = arith.constant dense<0.000000e+00> : vector<8xf32>
    %294 = vector.multi_reduction <add>, %289, %cst_120 [1] : vector<8x32xf32> to vector<8xf32>
    %295 = vector.shape_cast %294 : vector<8xf32> to vector<8x1xf32>
    %cst_121 = arith.constant 3.200000e+01 : f32
    %296 = vector.broadcast %cst_121 : f32 to vector<8x1xf32>
    %297 = arith.divf %295, %296 : vector<8x1xf32>
    %298 = vector.broadcast %297 : vector<8x1xf32> to vector<8x32xf32>
    %299 = arith.subf %289, %298 : vector<8x32xf32>
    %300 = arith.mulf %299, %299 : vector<8x32xf32>
    %cst_122 = arith.constant dense<0.000000e+00> : vector<8xf32>
    %301 = vector.multi_reduction <add>, %300, %cst_122 [1] : vector<8x32xf32> to vector<8xf32>
    %302 = vector.shape_cast %301 : vector<8xf32> to vector<8x1xf32>
    %cst_123 = arith.constant 3.200000e+01 : f32
    %303 = vector.broadcast %cst_123 : f32 to vector<8x1xf32>
    %304 = arith.divf %302, %303 : vector<8x1xf32>
    %cst_124 = arith.constant 9.99999996E-13 : f32
    %305 = vector.broadcast %cst_124 : f32 to vector<8x1xf32>
    %306 = arith.addf %304, %305 : vector<8x1xf32>
    %307 = math.rsqrt %306 : vector<8x1xf32>
    %308 = vector.broadcast %307 : vector<8x1xf32> to vector<8x32xf32>
    %309 = arith.mulf %299, %308 : vector<8x32xf32>
    %310 = vector.broadcast %291 : vector<1x32xf32> to vector<8x32xf32>
    %311 = arith.mulf %309, %310 : vector<8x32xf32>
    %312 = vector.broadcast %293 : vector<1x32xf32> to vector<8x32xf32>
    %313 = arith.addf %311, %312 : vector<8x32xf32>
    %314 = vector.extract_strided_slice %313 {offsets = [0, 0], sizes = [1, 32], strides = [1, 1]} : vector<8x32xf32> to vector<1x32xf32>
    %315 = arith.truncf %314 : vector<1x32xf32> to vector<1x32xbf16>
    %c0_125 = arith.constant 0 : index
    %c0_126 = arith.constant 0 : index
    %316 = vector.load %arg16[%c0_125, %c0_126] : memref<32x32xbf16, #tpu.memory_space<vmem>>, vector<32x32xbf16>
    %cst_127 = arith.constant dense<0.000000e+00> : vector<1x32xf32>
    %317 = tpu.matmul %315, %316, %cst_127 {dimension_numbers = #tpu.dot_dimension_numbers<[1], [0], [0], [1], [0, 0, 1, 1], [], []>} : vector<1x32xbf16>, vector<32x32xbf16>, vector<1x32xf32> -> vector<1x32xf32>
    %c0_128 = arith.constant 0 : index
    %c0_129 = arith.constant 0 : index
    %318 = vector.load %arg17[%c0_128, %c0_129] : memref<1x32xf32, #tpu.memory_space<vmem>>, vector<1x32xf32>
    %319 = arith.addf %317, %318 : vector<1x32xf32>
    %320 = math.tanh %319 : vector<1x32xf32>
    %321 = arith.truncf %320 : vector<1x32xf32> to vector<1x32xbf16>
    %c0_130 = arith.constant 0 : index
    %c0_131 = arith.constant 0 : index
    %322 = vector.load %arg18[%c0_130, %c0_131] : memref<32x2xbf16, #tpu.memory_space<vmem>>, vector<32x2xbf16>
    %cst_132 = arith.constant dense<0.000000e+00> : vector<1x2xf32>
    %323 = tpu.matmul %321, %322, %cst_132 {dimension_numbers = #tpu.dot_dimension_numbers<[1], [0], [0], [1], [0, 0, 1, 1], [], []>} : vector<1x32xbf16>, vector<32x2xbf16>, vector<1x2xf32> -> vector<1x2xf32>
    %c0_133 = arith.constant 0 : index
    %c0_134 = arith.constant 0 : index
    %324 = vector.load %arg19[%c0_133, %c0_134] : memref<1x2xf32, #tpu.memory_space<vmem>>, vector<1x2xf32>
    %325 = arith.addf %323, %324 : vector<1x2xf32>
    %c0_135 = arith.constant 0 : index
    %c0_136 = arith.constant 0 : index
    %c0_137 = arith.constant 0 : index
    %326 = vector.load %arg21[%c0_135, %c0_136, %c0_137] : memref<1x1x2xf32, #tpu.memory_space<vmem>>, vector<1x1x2xf32>
    %327 = vector.shape_cast %326 : vector<1x1x2xf32> to vector<1x2xf32>
    %328 = vector.shape_cast %325 : vector<1x2xf32> to vector<1x1x2xf32>
    tpu.vector_store %arg21[%c0_135, %c0_136, %c0_137], %328 {strides = array<i32>} : memref<1x1x2xf32, #tpu.memory_space<vmem>>, vector<1x1x2xf32>,
    %cst_138 = arith.constant dense<0xFF800000> : vector<1xf32>
    %329 = vector.multi_reduction <maximumf>, %325, %cst_138 [1] : vector<1x2xf32> to vector<1xf32>
    %330 = vector.shape_cast %329 : vector<1xf32> to vector<1x1xf32>
    %331 = vector.broadcast %330 : vector<1x1xf32> to vector<1x2xf32>
    %332 = arith.subf %325, %331 : vector<1x2xf32>
    %333 = math.exp %332 : vector<1x2xf32>
    %cst_139 = arith.constant dense<0.000000e+00> : vector<1xf32>
    %334 = vector.multi_reduction <add>, %333, %cst_139 [1] : vector<1x2xf32> to vector<1xf32>
    %335 = vector.shape_cast %334 : vector<1xf32> to vector<1x1xf32>
    %336 = math.log %335 : vector<1x1xf32>
    %c0_140 = arith.constant 0 : index
    %c0_141 = arith.constant 0 : index
    %c0_142 = arith.constant 0 : index
    %337 = vector.load %arg20[%c0_140, %c0_141, %c0_142] : memref<1x1x2xf32, #tpu.memory_space<vmem>>, vector<1x1x2xf32>
    %338 = vector.shape_cast %337 : vector<1x1x2xf32> to vector<1x2xf32>
    %339 = vector.broadcast %336 : vector<1x1xf32> to vector<1x2xf32>
    %340 = arith.subf %332, %339 : vector<1x2xf32>
    %341 = arith.mulf %338, %340 : vector<1x2xf32>
    %cst_143 = arith.constant dense<0.000000e+00> : vector<1xf32>
    %342 = vector.multi_reduction <add>, %341, %cst_143 [1] : vector<1x2xf32> to vector<1xf32>
    %343 = vector.shape_cast %342 : vector<1xf32> to vector<1x1xf32>
    %cst_144 = arith.constant 0.000000e+00 : f32
    %344 = vector.broadcast %cst_144 : f32 to vector<1x1xf32>
    %345 = arith.subf %344, %343 : vector<1x1xf32>
    %c0_145 = arith.constant 0 : index
    %c0_146 = arith.constant 0 : index
    %c0_147 = arith.constant 0 : index
    %346 = vector.load %arg22[%c0_145, %c0_146, %c0_147] : memref<1x1x1xf32, #tpu.memory_space<vmem>>, vector<1x1x1xf32>
    %347 = vector.shape_cast %346 : vector<1x1x1xf32> to vector<1x1xf32>
    %348 = vector.shape_cast %345 : vector<1x1xf32> to vector<1x1x1xf32>
    tpu.vector_store %arg22[%c0_145, %c0_146, %c0_147], %348 {strides = array<i32>} : memref<1x1x1xf32, #tpu.memory_space<vmem>>, vector<1x1x1xf32>,
    return
  }
  func.func @transform_0(%arg0: i32) -> (i32, i32, i32) {
    %c0_i32 = arith.constant 0 : i32
    %c0_i32_0 = arith.constant 0 : i32
    %c0_i32_1 = arith.constant 0 : i32
    return %arg0, %c0_i32, %c0_i32_0 : i32, i32, i32
  }
  func.func @transform_1(%arg0: i32) -> (i32, i32) {
    %c0_i32 = arith.constant 0 : i32
    %c0_i32_0 = arith.constant 0 : i32
    %c0_i32_1 = arith.constant 0 : i32
    return %c0_i32, %c0_i32_0 : i32, i32
  }
  func.func @transform_2(%arg0: i32) -> (i32, i32) {
    %c0_i32 = arith.constant 0 : i32
    %c0_i32_0 = arith.constant 0 : i32
    %c0_i32_1 = arith.constant 0 : i32
    return %c0_i32, %c0_i32_0 : i32, i32
  }
  func.func @transform_3(%arg0: i32) -> (i32, i32, i32) {
    %c0_i32 = arith.constant 0 : i32
    %c0_i32_0 = arith.constant 0 : i32
    %c0_i32_1 = arith.constant 0 : i32
    %c0_i32_2 = arith.constant 0 : i32
    return %c0_i32, %c0_i32_0, %c0_i32_1 : i32, i32, i32
  }
  func.func @transform_4(%arg0: i32) -> (i32, i32, i32) {
    %c0_i32 = arith.constant 0 : i32
    %c0_i32_0 = arith.constant 0 : i32
    %c0_i32_1 = arith.constant 0 : i32
    %c0_i32_2 = arith.constant 0 : i32
    return %c0_i32, %c0_i32_0, %c0_i32_1 : i32, i32, i32
  }
  func.func @transform_5(%arg0: i32) -> (i32, i32, i32) {
    %c0_i32 = arith.constant 0 : i32
    %c0_i32_0 = arith.constant 0 : i32
    %c0_i32_1 = arith.constant 0 : i32
    %c0_i32_2 = arith.constant 0 : i32
    return %c0_i32, %c0_i32_0, %c0_i32_1 : i32, i32, i32
  }
  func.func @transform_6(%arg0: i32) -> (i32, i32, i32) {
    %c0_i32 = arith.constant 0 : i32
    %c0_i32_0 = arith.constant 0 : i32
    %c0_i32_1 = arith.constant 0 : i32
    %c0_i32_2 = arith.constant 0 : i32
    return %c0_i32, %c0_i32_0, %c0_i32_1 : i32, i32, i32
  }
  func.func @transform_7(%arg0: i32) -> (i32, i32, i32) {
    %c0_i32 = arith.constant 0 : i32
    %c0_i32_0 = arith.constant 0 : i32
    %c0_i32_1 = arith.constant 0 : i32
    %c0_i32_2 = arith.constant 0 : i32
    return %c0_i32, %c0_i32_0, %c0_i32_1 : i32, i32, i32
  }
  func.func @transform_8(%arg0: i32) -> (i32, i32, i32) {
    %c0_i32 = arith.constant 0 : i32
    %c0_i32_0 = arith.constant 0 : i32
    %c0_i32_1 = arith.constant 0 : i32
    %c0_i32_2 = arith.constant 0 : i32
    return %c0_i32, %c0_i32_0, %c0_i32_1 : i32, i32, i32
  }
  func.func @transform_9(%arg0: i32) -> (i32, i32, i32) {
    %c0_i32 = arith.constant 0 : i32
    %c0_i32_0 = arith.constant 0 : i32
    %c0_i32_1 = arith.constant 0 : i32
    %c0_i32_2 = arith.constant 0 : i32
    return %c0_i32, %c0_i32_0, %c0_i32_1 : i32, i32, i32
  }
  func.func @transform_10(%arg0: i32) -> (i32, i32, i32) {
    %c0_i32 = arith.constant 0 : i32
    %c0_i32_0 = arith.constant 0 : i32
    %c0_i32_1 = arith.constant 0 : i32
    %c0_i32_2 = arith.constant 0 : i32
    return %c0_i32, %c0_i32_0, %c0_i32_1 : i32, i32, i32
  }
  func.func @transform_11(%arg0: i32) -> (i32, i32, i32) {
    %c0_i32 = arith.constant 0 : i32
    %c0_i32_0 = arith.constant 0 : i32
    %c0_i32_1 = arith.constant 0 : i32
    %c0_i32_2 = arith.constant 0 : i32
    return %c0_i32, %c0_i32_0, %c0_i32_1 : i32, i32, i32
  }
  func.func @transform_12(%arg0: i32) -> (i32, i32, i32) {
    %c0_i32 = arith.constant 0 : i32
    %c0_i32_0 = arith.constant 0 : i32
    %c0_i32_1 = arith.constant 0 : i32
    %c0_i32_2 = arith.constant 0 : i32
    return %c0_i32, %c0_i32_0, %c0_i32_1 : i32, i32, i32
  }
  func.func @transform_13(%arg0: i32) -> (i32, i32, i32) {
    %c0_i32 = arith.constant 0 : i32
    %c0_i32_0 = arith.constant 0 : i32
    %c0_i32_1 = arith.constant 0 : i32
    %c0_i32_2 = arith.constant 0 : i32
    return %c0_i32, %c0_i32_0, %c0_i32_1 : i32, i32, i32
  }
  func.func @transform_14(%arg0: i32) -> (i32, i32, i32) {
    %c0_i32 = arith.constant 0 : i32
    %c0_i32_0 = arith.constant 0 : i32
    %c0_i32_1 = arith.constant 0 : i32
    %c0_i32_2 = arith.constant 0 : i32
    return %c0_i32, %c0_i32_0, %c0_i32_1 : i32, i32, i32
  }
  func.func @transform_15(%arg0: i32) -> (i32, i32) {
    %c0_i32 = arith.constant 0 : i32
    %c0_i32_0 = arith.constant 0 : i32
    %c0_i32_1 = arith.constant 0 : i32
    return %c0_i32, %c0_i32_0 : i32, i32
  }
  func.func @transform_16(%arg0: i32) -> (i32, i32) {
    %c0_i32 = arith.constant 0 : i32
    %c0_i32_0 = arith.constant 0 : i32
    %c0_i32_1 = arith.constant 0 : i32
    return %c0_i32, %c0_i32_0 : i32, i32
  }
  func.func @transform_17(%arg0: i32) -> (i32, i32) {
    %c0_i32 = arith.constant 0 : i32
    %c0_i32_0 = arith.constant 0 : i32
    %c0_i32_1 = arith.constant 0 : i32
    return %c0_i32, %c0_i32_0 : i32, i32
  }
  func.func @transform_18(%arg0: i32) -> (i32, i32) {
    %c0_i32 = arith.constant 0 : i32
    %c0_i32_0 = arith.constant 0 : i32
    %c0_i32_1 = arith.constant 0 : i32
    return %c0_i32, %c0_i32_0 : i32, i32
  }
  func.func @transform_19(%arg0: i32) -> (i32, i32, i32) {
    %c0_i32 = arith.constant 0 : i32
    %c0_i32_0 = arith.constant 0 : i32
    %c0_i32_1 = arith.constant 0 : i32
    return %arg0, %c0_i32, %c0_i32_0 : i32, i32, i32
  }
  func.func @transform_20(%arg0: i32) -> (i32, i32, i32) {
    %c0_i32 = arith.constant 0 : i32
    %c0_i32_0 = arith.constant 0 : i32
    %c0_i32_1 = arith.constant 0 : i32
    return %arg0, %c0_i32, %c0_i32_0 : i32, i32, i32
  }
  func.func @transform_21(%arg0: i32) -> (i32, i32, i32) {
    %c0_i32 = arith.constant 0 : i32
    %c0_i32_0 = arith.constant 0 : i32
    %c0_i32_1 = arith.constant 0 : i32
    return %arg0, %c0_i32, %c0_i32_0 : i32, i32, i32
  }
}

</mosaic_0001>

<bundles_post_ra>
// kernel: bert_forward.1
= control target key start
LH: loop header
LB: loop body
LE: loop exit
PB: predicated region body
PF: predicated region fallthrough
CT: control target
= control target key end

     0   :  { %s3729_s0 = inlined_call_operand.vmem [shape: f32[2,8,32], index: 0, kind: input, shape index: {}]   ;;  %s3730_s1 = inlined_call_operand.vmem [shape: f32[1,32], index: 1, kind: input, shape index: {}]   ;;  %s3731_s2 = inlined_call_operand.vmem [shape: f32[1,32], index: 2, kind: input, shape index: {}]   ;;  %s3732_s3 = inlined_call_operand.vmem [shape: bf16[2,32,96], index: 3, kind: input, shape index: {}]   ;;  %s3733_s4 = inlined_call_operand.vmem [shape: f32[2,1,96], index: 4, kind: input, shape index: {}]   ;;  %s3734_s5 = inlined_call_operand.vmem [shape: bf16[2,32,32], index: 5, kind: input, shape index: {}]   ;;  %s3735_s6 = inlined_call_operand.vmem [shape: f32[2,1,32], index: 6, kind: input, shape index: {}]   ;;  %s3736_s7 = inlined_call_operand.vmem [shape: f32[2,1,32], index: 7, kind: input, shape index: {}]   ;;  %s3737_s8 = inlined_call_operand.vmem [shape: f32[2,1,32], index: 8, kind: input, shape index: {}]   ;;  %s3738_s9 = inlined_call_operand.vmem [shape: bf16[2,32,64], index: 9, kind: input, shape index: {}]   ;;  %s3739_s10 = inlined_call_operand.vmem [shape: f32[2,1,64], index: 10, kind: input, shape index: {}]   ;;  %s3740_s11 = inlined_call_operand.vmem [shape: bf16[2,64,32], index: 11, kind: input, shape index: {}]   ;;  %s3741_s12 = inlined_call_operand.vmem [shape: f32[2,1,32], index: 12, kind: input, shape index: {}]   ;;  %s3742_s13 = inlined_call_operand.vmem [shape: f32[2,1,32], index: 13, kind: input, shape index: {}]   ;;  %s3743_s14 = inlined_call_operand.vmem [shape: f32[2,1,32], index: 14, kind: input, shape index: {}]   ;;  %s3744_s15 = inlined_call_operand.vmem [shape: bf16[32,32], index: 15, kind: input, shape index: {}]   ;;  %s3745_s16 = inlined_call_operand.vmem [shape: f32[1,32], index: 16, kind: input, shape index: {}]   ;;  %s3746_s17 = inlined_call_operand.vmem [shape: bf16[32,2], index: 17, kind: input, shape index: {}]   ;;  %s3747_s18 = inlined_call_operand.vmem [shape: f32[1,2], index: 18, kind: input, shape index: {}]   ;;  %s3748_s19 = inlined_call_operand.vmem [shape: f32[2,1,2], index: 19, kind: input, shape index: {}]   ;;  %s3749_s20 = inlined_call_operand.hbm [shape: f32[2,1,2], index: 20, kind: output, shape index: {0}]   ;;  %s3750_s21 = inlined_call_operand.vmem [shape: f32[2,1,1], index: 21, kind: output, shape index: {1}]  }
   0x1   :  { %3772 = sst [smem:[#allocation11_spill]] %s3729_s0 }
   0x2   :  { %3773 = sst [smem:[#allocation12_spill]] %s3730_s1 }
   0x3   :  { %3774 = sst [smem:[#allocation13_spill]] %s3731_s2 }
   0x4   :  { %3775 = sst [smem:[#allocation14_spill]] %s3732_s3 }
   0x5   :  { %3776 = sst [smem:[#allocation15_spill]] %s3733_s4 }
   0x6   :  { %3777 = sst [smem:[#allocation16_spill]] %s3734_s5 }
   0x7   :  { %3778 = sst [smem:[#allocation17_spill]] %s3735_s6 }
   0x8   :  { %3779 = sst [smem:[#allocation18_spill]] %s3736_s7 }
   0x9   :  { %3780 = sst [smem:[#allocation19_spill]] %s3737_s8 }
   0xa   :  { %27 = vsyncpa [#allocation3], 0 }
   0xb   :  { %29 = vsyncpa [#allocation3 + $0x1], 0  ;;  %s3249_s2 = smov 0   ;;  %s3251_s25 = smov 0  }
   0xc   :  { %s3253_s26 = smov 0   ;;  %s3255_s27 = smov 0  }
   0xd LB: > { %3781 = sst [smem:[#allocation5_spill]] %s3114_s2  ;;  %s3270_s3 = sadd.s32 4294967295, %s3126_s27   ;;  %s3126_s27 = sphi %s3255_s27, %s3811_s27   ;;  %s3122_s26 = sphi %s3253_s26, %s3813_s26   ;;  %s3118_s25 = sphi %s3251_s25, %s3815_s25   ;;  %s3114_s2 = sphi %s3249_s2, %s3814_s2  }
   0xe   : > { %3782 = sst [smem:[#allocation6_spill]] %s3122_s26  ;;  %s2587_s28 = sadd.s32 4294967294, %s3126_s27  }
   0xf   : > { %3783 = sst [smem:[#allocation7_spill]] %s3126_s27  ;;  %s3274_s29 = sadd.s32 1, %s3126_s27  }
  0x10   : > { %3784 = sst [smem:[#allocation8_spill]] %s3274_s29  ;;  %s472_s0 = sadd.s32 1, %s3122_s26 }
  0x11   : > { %s469_s4 = ssub.s32 %s3126_s27, %s3274_s29  ;;  %p482_p0 = scmp.ne.s32.totalorder %s3122_s26, %s3118_s25 }
  0x12   : > { %p470_p1 = scmp.eq.s32.totalorder %s469_s4, 0  ;;  %p483_p2 = scmp.eq.s32.totalorder %s3270_s3, 1 }
  0x13   : > { %p488_p3 = scmp.ne.s32.totalorder %s3118_s25, %s3114_s2  ;;  %p489_p4 = scmp.eq.s32.totalorder %s2587_s28, 1 }
  0x14   : > { %s3285_s30 = scalar_select %p470_p1, %s3122_s26, %s472_s0  }
  0x15   : > { %p3287_p5 = por %p483_p2, %p482_p0  ;;  %p3291_p6 = por %p489_p4, %p488_p3 }
  0x16   : > { %3785 = sst [smem:[#allocation9_spill]] %s3285_s30  ;;  %p2590_p7 = scmp.ge.s32.totalorder %s3126_s27, 1 }
  0x17   : > { %s3787_s22 = scalar_select %p3291_p6, 1, 0 }
  0x18   : > { %p600_p8 = scmp.lt.s32.totalorder %s3126_s27, 3 }
  0x19   : > { %3788 = sst [smem:[#allocation10_spill]] %s3787_s22 }
  0x1a   : > { %p601_p9 = pnand %p2590_p7, %p600_p8 }
  0x1b   : > { %p664_p10 = scmp.lt.s32.totalorder (!%p601_p9), %s3270_s3, 1  ;;  %s3789_s0 = sld [smem:[#allocation11_spill]] (!%p601_p9) }
  0x1c   : > { %604 = sbr.rel (%p601_p9) target bundleno = 6212 (0x1844), region = 100  ;;  %s3790_s29 = sld [smem:[#allocation14_spill]] (!%p601_p9) }
  0x1d   : > { %s3791_s28 = sld [smem:[#allocation12_spill]] (!%p601_p9)  ;;  %s3760_s22 = smov (!%p601_p9), 96  }
  0x1e   : > { %s3793_s26 = sld [smem:[#allocation15_spill]] (!%p601_p9)  ;;  %s3765_s24 = smov (!%p601_p9), 24  }
  0x1f   : > { %s3796_s6 = sld [smem:[#allocation17_spill]] (!%p601_p9)  ;;  %s3803_s2 = smov (!%p601_p9), 64  }
  0x20   : > { %s3797_s7 = sld [smem:[#allocation18_spill]] (!%p601_p9)  ;;  %s3138_s27 = smov (!%p601_p9), [#allocation2]  }
  0x21   : > { %s3299_s23 = scalar_select %p664_p10, %s3270_s3, 1  ;;  %vm678_vm0 = vcmask 261120   ;;  %v3128_v8 = vmov 0.0   ;;  %vm3129_vm1 = vmmov 0   ;;  %vm784_vm2 = vcmask 64512  }
  0x22   : > { %v2990_v7 = vld [vmem:[%s3790_s29 + $0x8] sm:$0xff]   ;;  %2757 = vmatprep.subr.bf16.mxu0 %v3128_v8  ;;  %2761 = vmatprep.mubr.msk.bf16.mxu0 %vm3129_vm1, %v3128_v8  ;;  %v2991_v9 = vld [vmem:[%s3790_s29] sm:$0xff]   ;;  %vm1028_vm3 = vcmask 1043456   ;;  %vm1229_vm4 = vcmask 130048   ;;  %vm1231_vm5 = vcmask 195584   ;;  %s3798_s8 = sld [smem:[#allocation19_spill]] }
  0x23   : > { %s2591_s1 = sshll.u32 %s3299_s23, 3  ;;  %2758 = vmatpush3.bf16.msra.mxu0 %v2990_v7  ;;  %2765 = vmatprep.subr.bf16.mxu1 %v3128_v8  ;;  %v2592_v14 = vld [vmem:[%s3791_s28] ss:$0 sm:$0xff]  ;;  %s3762_s28 = smov 104   ;;  %vm1446_vm6 = vcmask 523264   ;;  %vm2463_vm7 = vcmask 8192  }
  0x24   : > { %s667_s4 = scalar_lea.vmem %s3789_s0, %s2591_s1  ;;  %2759 = vmatprep.subr.bf16.mxu0 %v3128_v8  ;;  %2767 = vmatprep.mubr.msk.bf16.mxu1 %vm3129_vm1, %v3128_v8  ;;  %s3792_s1 = sld [smem:[#allocation13_spill]]  ;;  %v2594_v20 = vld [vmem:[%s3793_s26] ss:$0 sm:$0xff] }
  0x25   : > { %v675_v0 = vld [vmem:[%s667_s4] sm:$0xff]  ;;  %s3794_s30 = smov %s3793_s26  ;;  %s3763_s0 = smov 120  }
  0x26   : > { %v679_v1 = vsel %vm678_vm0, %v675_v0, 0.0  ;;  %s3764_s4 = smov 112   ;;  %s3799_s26 = smov 112  }
  0x27   : > { %680 = vadd.xlane.f32.xlu0 %v679_v1  ;;  %2760 = vmatpush3.bf16.msra.mxu0 %v2991_v9 }
  0x28   : > { %2771 = vmatprep.subr.bf16.mxu0 %v3128_v8 }
  0x2a   : > { %v2593_v16 = vld [vmem:[%s3792_s1] ss:$0 sm:$0xff]  ;;  %s3758_s1 = smov 64  }
  0xb0   : > { %v681_v2 = vpop.xlane.xlu0 %680 }
  0xb1   : > { %v683_v3 = vmul.f32 0.03125, %v681_v2 }
  0xb3   : > { %v684_v4 = vsub.f32 %v675_v0, %v683_v3 }
  0xb5   : > { %v685_v5 = vmul.f32 %v684_v4, %v684_v4 }
  0xb7   : > { %v686_v6 = vsel %vm678_vm0, %v685_v5, 0.0 }
  0xb8   : > { %687 = vadd.xlane.f32.xlu0 %v686_v6 }
 0x141   : > { %v688_v10 = vpop.xlane.xlu0 %687 }
 0x142   : > { %v689_v11 = vmul.f32 0.03125, %v688_v10 }
 0x144   : > { %v690_v12 = vadd.f32 1e-12, %v689_v11 }
 0x146   : > { %3014 = vrsqrt.f32 %v690_v12 }
 0x153   : > { %v3015_v13 = vpop.eup %3014 }
 0x154   : > { %v692_v15 = vmul.f32 %v3015_v13, %v684_v4 }
 0x156   : > { %v699_v17 = vmul.f32 %v2592_v14, %v692_v15 }
 0x158   : > { %v3327_v18 = vadd.f32 %v2593_v16, %v699_v17 }
 0x15a   : > { %v707_v19 = vpack.c.bf16 %v3327_v18, %v3327_v18 }
 0x15c   : > { %2762 = vmatmul.mubr.msk.bf16.vlgmr.msra.gmra.mxu0 %vm678_vm0, %v707_v19 }
 0x15d   : > { %2773 = vmatprep.mubr.msk.bf16.mxu0 %vm3129_vm1, %v3128_v8 }
 0x21c   : > { %v768_v21 = vpop.f32.mrf.mxu0 }
 0x21d   : > { %v769_v22 = vadd.f32 %v2594_v20, %v768_v21 }
 0x21e   : > { %v2763_v23 = vpop.f32.mrf.mxu0 }
 0x21f   : > { %v3337_v24 = vpack.c.bf16 %v769_v22, %v769_v22 }
 0x220   : > { %v771_v25 = vpop.f32.mrf.mxu0 }
 0x221   : > { %780 = vrot.lane.b32.xlu0 %v3337_v24, %s3762_s28  ;;  %776 = vrot.lane.b32.xlu1 %v3337_v24, %s3763_s0  ;;  %s3767_s0 = smov 8   ;;  %s3800_s28 = smov 120  }
 0x222   : > { %v2764_v26 = vpop.f32.mrf.mxu0 }
 0x225   : > { %778 = vrot.lane.b32.xlu1 %v3337_v24, %s3764_s4  ;;  %s3766_s4 = smov 16  }
 0x229   : > { %782 = vrot.lane.b32.xlu1 %v3337_v24, %s3760_s22 }
 0x293   : > { %v3347_v27 = vpop.permute.xlu1 %776  ;;  %v3355_v29 = vpop.permute.xlu0 %780 }
 0x294   : > { %831 = vrot.lane.b32.xlu1 %v3347_v27, %s3760_s22 }
 0x297   : > { %v3351_v28 = vpop.permute.xlu1 %778 }
 0x298   : > { %879 = vrot.lane.b32.xlu1 %v3351_v28, %s3760_s22 }
 0x29b   : > { %v783_v30 = vpop.permute.xlu1 %782 }
 0x29c   : > { %927 = vrot.lane.b32.xlu1 %v3355_v29, %s3760_s22  ;;  %v789_v31 = vsel %vm784_vm2, %v783_v30, 0  ;;  %s3802_s22 = smov 96  }
 0x29d   : > { %2766 = vmatpush3.bf16.xpose.msra.mxu1 %v789_v31 }
 0x29e   : > { %2777 = vmatprep.subr.bf16.mxu1 %v3128_v8 }
 0x2a4   : > { %2768 = vmatmul.mubr.msk.bf16.vlgmr.msra.gmra.mxu1 %vm784_vm2, %v3337_v24 }
 0x2a5   : > { %2779 = vmatprep.mubr.msk.bf16.mxu1 %vm3129_vm1, %v3128_v8 }
 0x306   : > { %v832_v32 = vpop.permute.xlu1 %831 }
 0x307   : > { %v837_v33 = vsel %vm784_vm2, %v832_v32, 0 }
 0x308   : > { %2772 = vmatpush3.bf16.xpose.msra.mxu0 %v837_v33 }
 0x309   : > { %2783 = vmatprep.subr.bf16.mxu0 %v3128_v8 }
 0x30a   : > { %v880_v34 = vpop.permute.xlu1 %879 }
 0x30b   : > { %v885_v35 = vsel %vm784_vm2, %v880_v34, 0 }
 0x30c   : > { %2778 = vmatpush3.bf16.xpose.msra.mxu1 %v885_v35 }
 0x30d   : > { %2789 = vmatprep.subr.bf16.mxu1 %v3128_v8 }
 0x30e   : > { %v928_v36 = vpop.permute.xlu1 %927 }
 0x30f   : > { %v933_v37 = vsel %vm784_vm2, %v928_v36, 0  ;;  %2774 = vmatmul.mubr.msk.bf16.vlgmr.msra.gmra.mxu0 %vm784_vm2, %v3347_v27 }
 0x310   : > { %2784 = vmatpush3.bf16.xpose.msra.mxu0 %v933_v37  ;;  %2785 = vmatprep.mubr.msk.bf16.mxu0 %vm3129_vm1, %v3128_v8 }
 0x311   : > { %2795 = vmatprep.subr.bf16.mxu0 %v3128_v8 }
 0x313   : > { %2780 = vmatmul.mubr.msk.bf16.vlgmr.msra.gmra.mxu1 %vm784_vm2, %v3351_v28 }
 0x314   : > { %2791 = vmatprep.mubr.msk.bf16.mxu1 %vm3129_vm1, %v3128_v8 }
 0x317   : > { %2786 = vmatmul.mubr.msk.bf16.vlgmr.msra.gmra.mxu0 %vm784_vm2, %v3355_v29 }
 0x318   : > { %2797 = vmatprep.mubr.msk.bf16.mxu0 %vm3129_vm1, %v3128_v8 }
 0x364   : > { %v825_v38 = vpop.f32.mrf.mxu1 }
 0x365   : > { %v975_v39 = vsel %vm784_vm2, %v825_v38, -inf }
 0x366   : > { %976 = vmax.xlane.f32.xlu1 %v975_v39  ;;  %v2769_v40 = vpop.f32.mrf.mxu1 }
 0x368   : > { %v828_v41 = vpop.f32.mrf.mxu1 }
 0x36a   : > { %v2770_v42 = vpop.f32.mrf.mxu1 }
 0x3cf   : > { %v873_v43 = vpop.f32.mrf.mxu0 }
 0x3d0   : > { %v978_v44 = vsel %vm784_vm2, %v873_v43, -inf }
 0x3d1   : > { %979 = vmax.xlane.f32.xlu0 %v978_v44  ;;  %v2775_v45 = vpop.f32.mrf.mxu0 }
 0x3d3   : > { %v876_v46 = vpop.f32.mrf.mxu0  ;;  %v921_v47 = vpop.f32.mrf.mxu1 }
 0x3d4   : > { %v981_v48 = vsel %vm784_vm2, %v921_v47, -inf }
 0x3d5   : > { %982 = vmax.xlane.f32.xlu1 %v981_v48  ;;  %v2776_v49 = vpop.f32.mrf.mxu0  ;;  %v2781_v50 = vpop.f32.mrf.mxu1 }
 0x3d7   : > { %v924_v51 = vpop.f32.mrf.mxu1  ;;  %v969_v52 = vpop.f32.mrf.mxu0 }
 0x3d8   : > { %v984_v53 = vsel %vm784_vm2, %v969_v52, -inf }
 0x3d9   : > { %v2782_v54 = vpop.f32.mrf.mxu1  ;;  %985 = vmax.xlane.f32.xlu0 %v984_v53  ;;  %v2787_v55 = vpop.f32.mrf.mxu0 }
 0x3db   : > { %v972_v56 = vpop.f32.mrf.mxu0 }
 0x3dd   : > { %v2788_v57 = vpop.f32.mrf.mxu0 }
 0x3e6   : > { %1023 = vrot.lane.b32.xlu1 %v3337_v24, %s3758_s1 }
 0x3ef   : > { %v977_v58 = vpop.xlane.xlu1 %976 }
 0x3f0   : > { %v987_v59 = vsub.f32 %v825_v38, %v977_v58 }
 0x3f2   : > { %v991_v60 = vmul.f32 1.442695, %v987_v59 }
 0x3f4   : > { %3016 = vpow2.f32 %v991_v60 }
 0x401   : > { %v3017_v61 = vpop.eup %3016 }
 0x402   : > { %v999_v62 = vsel %vm784_vm2, %v3017_v61, 0.0 }
 0x40a   : > { %1000 = vadd.xlane.f32.xlu1 %v999_v62 }
 0x45a   : > { %v980_v63 = vpop.xlane.xlu0 %979 }
 0x45b   : > { %v988_v0 = vsub.f32 %v873_v43, %v980_v63 }
 0x45d   : > { %v993_v1 = vmul.f32 1.442695, %v988_v0 }
 0x45e   : > { %v983_v2 = vpop.xlane.xlu1 %982 }
 0x45f   : > { %3018 = vpow2.f32 %v993_v1  ;;  %v989_v3 = vsub.f32 %v921_v47, %v983_v2  ;;  %v2606_v1 = vld [vmem:[%s3796_s6] ss:$0 sm:$0xff] }
 0x461   : > { %v995_v4 = vmul.f32 1.442695, %v989_v3 }
 0x462   : > { %v1024_v5 = vpop.permute.xlu1 %1023  ;;  %v986_v6 = vpop.xlane.xlu0 %985 }
 0x463   : > { %3020 = vpow2.f32 %v995_v4  ;;  %v1030_v7 = vsel %vm1028_vm3, %v1024_v5, 0  ;;  %v990_v9 = vsub.f32 %v969_v52, %v986_v6 }
 0x464   : > { %2790 = vmatpush3.bf16.msra.mxu1 %v1030_v7 }
 0x465   : > { %v997_v10 = vmul.f32 1.442695, %v990_v9  ;;  %2801 = vmatprep.subr.bf16.mxu1 %v3128_v8 }
 0x467   : > { %3022 = vpow2.f32 %v997_v10 }
 0x46c   : > { %v3019_v11 = vpop.eup %3018 }
 0x46d   : > { %v1002_v12 = vsel %vm784_vm2, %v3019_v11, 0.0 }
 0x46e   : > { %1003 = vadd.xlane.f32.xlu0 %v1002_v12 }
 0x470   : > { %v3021_v13 = vpop.eup %3020 }
 0x471   : > { %v1005_v14 = vsel %vm784_vm2, %v3021_v13, 0.0 }
 0x472   : > { %1006 = vadd.xlane.f32.xlu1 %v1005_v14 }
 0x474   : > { %v3023_v15 = vpop.eup %3022 }
 0x475   : > { %v1008_v16 = vsel %vm784_vm2, %v3023_v15, 0.0 }
 0x476   : > { %1009 = vadd.xlane.f32.xlu0 %v1008_v16 }
 0x483   : > { %1120 = vrot.lane.b32.xlu1 %v3351_v28, %s3758_s1 }
 0x487   : > { %1168 = vrot.lane.b32.xlu1 %v3355_v29, %s3758_s1 }
 0x48c   : > { %1072 = vrot.lane.b32.xlu0 %v3347_v27, %s3758_s1  ;;  %s3795_s1 = sld [smem:[#allocation16_spill]] }
 0x492   : > { %v2992_v44 = vld [vmem:[%s3795_s1 + $0x8] sm:$0xff]   ;;  %v2993_v45 = vld [vmem:[%s3795_s1] sm:$0xff]  }
 0x493   : > { %v1001_v17 = vpop.xlane.xlu1 %1000 }
 0x494   : > { %3024 = vrcp.f32 %v1001_v17 }
 0x4a1   : > { %v3025_v19 = vpop.eup %3024 }
 0x4a2   : > { %v1015_v20 = vmul.f32 %v3025_v19, %v3017_v61 }
 0x4a4   : > { %v1019_v21 = vpack.c.bf16 %v1015_v20, %v1015_v20 }
 0x4a6   : > { %2792 = vmatmul.mubr.msk.bf16.vlgmr.msra.gmra.mxu1 %vm784_vm2, %v1019_v21  ;;  %v2610_v21 = vld [vmem:[%s3797_s7] ss:$0 sm:$0xff] }
 0x4a7   : > { %2803 = vmatprep.mubr.msk.bf16.mxu1 %vm3129_vm1, %v3128_v8 }
 0x4f7   : > { %v1004_v22 = vpop.xlane.xlu0 %1003 }
 0x4f8   : > { %3026 = vrcp.f32 %v1004_v22 }
 0x4fb   : > { %v1007_v23 = vpop.xlane.xlu1 %1006 }
 0x4fc   : > { %3028 = vrcp.f32 %v1007_v23  ;;  %v2611_v23 = vld [vmem:[%s3798_s8] ss:$0 sm:$0xff] }
 0x4ff   : > { %v1121_v24 = vpop.permute.xlu1 %1120  ;;  %v1010_v25 = vpop.xlane.xlu0 %1009 }
 0x500   : > { %v1126_v26 = vsel %vm1028_vm3, %v1121_v24, 0  ;;  %3030 = vrcp.f32 %v1010_v25 }
 0x501   : > { %2802 = vmatpush3.bf16.msra.mxu1 %v1126_v26 }
 0x502   : > { %2813 = vmatprep.subr.bf16.mxu1 %v3128_v8 }
 0x503   : > { %v1073_v27 = vpop.permute.xlu0 %1072  ;;  %v1169_v31 = vpop.permute.xlu1 %1168 }
 0x504   : > { %v1078_v28 = vsel %vm1028_vm3, %v1073_v27, 0  ;;  %v1174_v34 = vsel %vm1028_vm3, %v1169_v31, 0  ;;  %v2996_v27 = vld [vmem:[%s3740_s11 + $0x18] sm:$0xff]   ;;  %v2612_v31 = vld [vmem:[%s3739_s10] ss:$0 sm:$0xff] }
 0x505   : > { %v3027_v29 = vpop.eup %3026  ;;  %2796 = vmatpush3.bf16.msra.mxu0 %v1078_v28  ;;  %v2997_v28 = vld [vmem:[%s3740_s11 + $0x10] sm:$0xff]  }
 0x506   : > { %2807 = vmatprep.subr.bf16.mxu0 %v3128_v8  ;;  %v1016_v30 = vmul.f32 %v3027_v29, %v3019_v11  ;;  %v2998_v29 = vld [vmem:[%s3740_s11 + $0x8] sm:$0xff]  }
 0x508   : > { %v1020_v32 = vpack.c.bf16 %v1016_v30, %v1016_v30  ;;  %v2999_v30 = vld [vmem:[%s3740_s11] sm:$0xff]  }
 0x509   : > { %v3029_v33 = vpop.eup %3028 }
 0x50a   : > { %2798 = vmatmul.mubr.msk.bf16.vlgmr.msra.gmra.mxu0 %vm784_vm2, %v1020_v32  ;;  %v1017_v35 = vmul.f32 %v3029_v33, %v3021_v13 }
 0x50b   : > { %2808 = vmatpush3.bf16.msra.mxu0 %v1174_v34  ;;  %2809 = vmatprep.mubr.msk.bf16.mxu0 %vm3129_vm1, %v3128_v8 }
 0x50c   : > { %v1021_v36 = vpack.c.bf16 %v1017_v35, %v1017_v35  ;;  %2821 = vmatprep.subr.bf16.mxu0 %v3128_v8 }
 0x50d   : > { %v3031_v37 = vpop.eup %3030 }
 0x50e   : > { %2804 = vmatmul.mubr.msk.bf16.vlgmr.msra.gmra.mxu1 %vm784_vm2, %v1021_v36  ;;  %v1018_v38 = vmul.f32 %v3031_v37, %v3023_v15  ;;  %v2994_v15 = vld [vmem:[%s3738_s9 + $0x8] sm:$0xff]  }
 0x50f   : > { %2817 = vmatprep.mubr.msk.bf16.mxu1 %vm3129_vm1, %v3128_v8  ;;  %2814 = vmatpush3.bf16.msra.mxu1 %v2992_v44 }
 0x510   : > { %v1022_v39 = vpack.c.bf16 %v1018_v38, %v1018_v38  ;;  %2815 = vmatprep.subr.bf16.mxu1 %v3128_v8 }
 0x512   : > { %2810 = vmatmul.mubr.msk.bf16.vlgmr.msra.gmra.mxu0 %vm784_vm2, %v1022_v39 }
 0x513   : > { %2825 = vmatprep.mubr.msk.bf16.mxu0 %vm3129_vm1, %v3128_v8  ;;  %2816 = vmatpush3.bf16.msra.mxu1 %v2993_v45 }
 0x514   : > { %2829 = vmatprep.subr.bf16.mxu1 %v3128_v8  ;;  %2822 = vmatpush3.bf16.msra.mxu0 %v2994_v15 }
 0x515   : > { %2823 = vmatprep.subr.bf16.mxu0 %v3128_v8 }
 0x566   : > { %v1066_v40 = vpop.f32.mrf.mxu1 }
 0x568   : > { %v2793_v41 = vpop.f32.mrf.mxu1 }
 0x56a   : > { %v1069_v42 = vpop.f32.mrf.mxu1 }
 0x56c   : > { %v2794_v43 = vpop.f32.mrf.mxu1 }
 0x5ca   : > { %v1114_v46 = vpop.f32.mrf.mxu0 }
 0x5cb   : > { %1217 = vrot.lane.b32.xlu0 %v1114_v46, %s3767_s0  ;;  %s670_s0 = scalar_lea.vmem %s3748_s19, %s3299_s23 }
 0x5cc   : > { %v2799_v47 = vpop.f32.mrf.mxu0 }
 0x5cd   : > { %v2616_v47 = vld [vmem:[%s3741_s12] ss:$0 sm:$0xff] }
 0x5ce   : > { %v1117_v48 = vpop.f32.mrf.mxu0  ;;  %v1162_v49 = vpop.f32.mrf.mxu1 }
 0x5cf   : > { %1221 = vrot.lane.b32.xlu1 %v1162_v49, %s3766_s4  ;;  %s2688_s4 = sshll.u32 %s3270_s3, 4 }
 0x5d0   : > { %v2800_v50 = vpop.f32.mrf.mxu0  ;;  %v2805_v51 = vpop.f32.mrf.mxu1 }
 0x5d2   : > { %v1165_v52 = vpop.f32.mrf.mxu1  ;;  %v1210_v53 = vpop.f32.mrf.mxu0 }
 0x5d3   : > { %1225 = vrot.lane.b32.xlu0 %v1210_v53, %s3765_s24  ;;  %s3801_s24 = smov 104  }
 0x5d4   : > { %v2806_v54 = vpop.f32.mrf.mxu1  ;;  %v2811_v55 = vpop.f32.mrf.mxu0 }
 0x5d6   : > { %v1213_v56 = vpop.f32.mrf.mxu0 }
 0x5d8   : > { %v2812_v57 = vpop.f32.mrf.mxu0 }
 0x63d   : > { %v1218_v58 = vpop.permute.xlu0 %1217 }
 0x63e   : > { %v1228_v60 = vsel %vm784_vm2, %v1066_v40, %v1218_v58 }
 0x641   : > { %v1222_v59 = vpop.permute.xlu1 %1221 }
 0x642   : > { %v1230_v61 = vsel %vm1229_vm4, %v1228_v60, %v1222_v59  ;;  %v3000_v60 = vld [vmem:[%s3790_s29 + $0x18] sm:$0xff]  }
 0x645   : > { %v1226_v62 = vpop.permute.xlu0 %1225 }
 0x646   : > { %v1232_v63 = vsel %vm1231_vm5, %v1230_v61, %v1226_v62  ;;  %v3001_v61 = vld [vmem:[%s3790_s29 + $0x10] sm:$0xff]  }
 0x647   : > { %v1233_v0 = vpack.c.bf16 %v1232_v63, %v1232_v63 }
 0x649   : > { %2818 = vmatmul.mubr.msk.bf16.vlgmr.msra.gmra.mxu1 %vm678_vm0, %v1233_v0 }
 0x64a   : > { %2837 = vmatprep.mubr.msk.bf16.mxu1 %vm3129_vm1, %v3128_v8  ;;  %2830 = vmatpush3.bf16.msra.mxu1 %v2996_v27 }
 0x64b   : > { %2831 = vmatprep.subr.bf16.mxu1 %v3128_v8 }
 0x64e   : > { %2832 = vmatpush3.bf16.msra.mxu1 %v2997_v28 }
 0x64f   : > { %2833 = vmatprep.subr.bf16.mxu1 %v3128_v8 }
 0x652   : > { %2834 = vmatpush3.bf16.msra.mxu1 %v2998_v29 }
 0x653   : > { %2835 = vmatprep.subr.bf16.mxu1 %v3128_v8 }
 0x656   : > { %2836 = vmatpush3.bf16.msra.mxu1 %v2999_v30 }
 0x657   : > { %2855 = vmatprep.subr.bf16.mxu1 %v3128_v8 }
 0x709   : > { %v1294_v2 = vpop.f32.mrf.mxu1 }
 0x70a   : > { %v1295_v3 = vadd.f32 %v2606_v1, %v1294_v2  ;;  %v2622_v2 = vld [vmem:[%s3742_s13] ss:$0 sm:$0xff] }
 0x70b   : > { %v2819_v4 = vpop.f32.mrf.mxu1 }
 0x70c   : > { %v1300_v5 = vadd.f32 %v1295_v3, %v3327_v18  ;;  %v2995_v18 = vld [vmem:[%s3738_s9] sm:$0xff]  }
 0x70d   : > { %v1297_v6 = vpop.f32.mrf.mxu1  ;;  %2824 = vmatpush3.bf16.msra.mxu0 %v2995_v18  ;;  %v2623_v4 = vld [vmem:[%s3743_s14] ss:$0 sm:$0xff] }
 0x70e   : > { %v1303_v7 = vsel %vm678_vm0, %v1300_v5, 0.0  ;;  %2841 = vmatprep.subr.bf16.mxu0 %v3128_v8 }
 0x70f   : > { %1304 = vadd.xlane.f32.xlu1 %v1303_v7  ;;  %v2820_v9 = vpop.f32.mrf.mxu1 }
 0x710   : > { %v2629_v9 = vld [vmem:[%s3794_s30 + $0x1] ss:$0 sm:$0xff] }
 0x798   : > { %v1305_v10 = vpop.xlane.xlu1 %1304 }
 0x799   : > { %v1306_v11 = vmul.f32 0.03125, %v1305_v10 }
 0x79b   : > { %v1307_v12 = vsub.f32 %v1300_v5, %v1306_v11 }
 0x79d   : > { %v1308_v13 = vmul.f32 %v1307_v12, %v1307_v12 }
 0x79f   : > { %v1309_v14 = vsel %vm678_vm0, %v1308_v13, 0.0 }
 0x7a0   : > { %1310 = vadd.xlane.f32.xlu0 %v1309_v14 }
 0x829   : > { %v1311_v16 = vpop.xlane.xlu0 %1310 }
 0x82a   : > { %v1312_v17 = vmul.f32 0.03125, %v1311_v16 }
 0x82c   : > { %v1313_v19 = vadd.f32 1e-12, %v1312_v17 }
 0x82e   : > { %3032 = vrsqrt.f32 %v1313_v19 }
 0x83b   : > { %v3033_v20 = vpop.eup %3032 }
 0x83c   : > { %v1315_v22 = vmul.f32 %v3033_v20, %v1307_v12 }
 0x83e   : > { %v1322_v24 = vmul.f32 %v2610_v21, %v1315_v22 }
 0x840   : > { %v1329_v25 = vadd.f32 %v2611_v23, %v1322_v24 }
 0x842   : > { %v1330_v26 = vpack.c.bf16 %v1329_v25, %v1329_v25 }
 0x844   : > { %2826 = vmatmul.mubr.msk.bf16.vlgmr.msra.gmra.mxu0 %vm678_vm0, %v1330_v26 }
 0x845   : > { %2845 = vmatprep.mubr.msk.bf16.mxu0 %vm3129_vm1, %v3128_v8  ;;  %2842 = vmatpush3.bf16.msra.mxu0 %v3000_v60 }
 0x846   : > { %2843 = vmatprep.subr.bf16.mxu0 %v3128_v8 }
 0x849   : > { %2844 = vmatpush3.bf16.msra.mxu0 %v3001_v61 }
 0x84a   : > { %2849 = vmatprep.subr.bf16.mxu0 %v3128_v8 }
 0x904   : > { %v1391_v32 = vpop.f32.mrf.mxu0 }
 0x905   : > { %v1392_v33 = vadd.f32 %v2612_v31, %v1391_v32 }
 0x906   : > { %v2827_v34 = vpop.f32.mrf.mxu0 }
 0x907   : > { %v1398_v35 = vmul.f32 0.044715, %v1392_v33  ;;  %v1397_v43 = vmul.f32 0.5, %v1392_v33 }
 0x908   : > { %v1394_v36 = vpop.f32.mrf.mxu0 }
 0x909   : > { %v1399_v37 = vmul.f32 %v1398_v35, %v1392_v33 }
 0x90a   : > { %v2828_v38 = vpop.f32.mrf.mxu0 }
 0x90b   : > { %v1400_v39 = vmul.f32 %v1399_v37, %v1392_v33 }
 0x90d   : > { %v1401_v40 = vadd.f32 %v1400_v39, %v1392_v33 }
 0x90f   : > { %v1402_v41 = vmul.f32 0.7978846, %v1401_v40 }
 0x911   : > { %3034 = vtanh.f32 %v1402_v41 }
 0x91e   : > { %v3035_v42 = vpop.eup %3034 }
 0x91f   : > { %v1404_v44 = vadd.f32 1.0, %v3035_v42 }
 0x921   : > { %v1405_v45 = vmul.f32 %v1404_v44, %v1397_v43 }
 0x923   : > { %v1406_v46 = vpack.c.bf16 %v1405_v45, %v1405_v45 }
 0x925   : > { %2838 = vmatmul.mubr.msk.bf16.vlgmr.msra.gmra.mxu1 %vm1446_vm6, %v1406_v46 }
 0x926   : > { %2857 = vmatprep.mubr.msk.bf16.mxu1 %vm3129_vm1, %v3128_v8 }
 0x9e5   : > { %v1484_v48 = vpop.f32.mrf.mxu1 }
 0x9e6   : > { %v1485_v49 = vadd.f32 %v2616_v47, %v1484_v48 }
 0x9e7   : > { %v2839_v50 = vpop.f32.mrf.mxu1 }
 0x9e8   : > { %v1490_v51 = vadd.f32 %v1485_v49, %v1329_v25 }
 0x9e9   : > { %v1487_v52 = vpop.f32.mrf.mxu1 }
 0x9ea   : > { %v1493_v53 = vsel %vm678_vm0, %v1490_v51, 0.0 }
 0x9eb   : > { %1494 = vadd.xlane.f32.xlu0 %v1493_v53  ;;  %v2840_v54 = vpop.f32.mrf.mxu1 }
 0xa74   : > { %v1495_v55 = vpop.xlane.xlu0 %1494 }
 0xa75   : > { %v1496_v56 = vmul.f32 0.03125, %v1495_v55 }
 0xa77   : > { %v1497_v57 = vsub.f32 %v1490_v51, %v1496_v56 }
 0xa79   : > { %v1498_v58 = vmul.f32 %v1497_v57, %v1497_v57 }
 0xa7b   : > { %v1499_v59 = vsel %vm678_vm0, %v1498_v58, 0.0 }
 0xa7c   : > { %1500 = vadd.xlane.f32.xlu1 %v1499_v59 }
 0xb05   : > { %v1501_v62 = vpop.xlane.xlu1 %1500 }
 0xb06   : > { %v1502_v63 = vmul.f32 0.03125, %v1501_v62 }
 0xb08   : > { %v1503_v0 = vadd.f32 1e-12, %v1502_v63 }
 0xb0a   : > { %3036 = vrsqrt.f32 %v1503_v0 }
 0xb17   : > { %v3037_v1 = vpop.eup %3036 }
 0xb18   : > { %v1505_v3 = vmul.f32 %v3037_v1, %v1497_v57 }
 0xb1a   : > { %v1512_v5 = vmul.f32 %v2622_v2, %v1505_v3 }
 0xb1c   : > { %v3500_v6 = vadd.f32 %v2623_v4, %v1512_v5 }
 0xb1e   : > { %v1520_v7 = vpack.c.bf16 %v3500_v6, %v3500_v6 }
 0xb20   : > { %2846 = vmatmul.mubr.msk.bf16.vlgmr.msra.gmra.mxu0 %vm678_vm0, %v1520_v7 }
 0xb21   : > { %2851 = vmatprep.mubr.msk.bf16.mxu0 %vm3129_vm1, %v3128_v8 }
 0xbe0   : > { %v1583_v10 = vpop.f32.mrf.mxu0 }
 0xbe1   : > { %v1584_v11 = vadd.f32 %v2629_v9, %v1583_v10 }
 0xbe2   : > { %v2847_v12 = vpop.f32.mrf.mxu0 }
 0xbe3   : > { %v1589_v13 = vpack.c.bf16 %v1584_v11, %v1584_v11 }
 0xbe4   : > { %v1586_v14 = vpop.f32.mrf.mxu0 }
 0xbe5   : > { %1593 = vrot.lane.b32.xlu1 %v1589_v13, %s3799_s26  ;;  %1591 = vrot.lane.b32.xlu0 %v1589_v13, %s3800_s28  ;;  %s3804_s28 = smov 8   ;;  %s3770_s26 = sand.u32 1, %s3118_s25  }
 0xbe6   : > { %v2848_v15 = vpop.f32.mrf.mxu0 }
 0xbe9   : > { %1595 = vrot.lane.b32.xlu1 %v1589_v13, %s3801_s24  ;;  %1597 = vrot.lane.b32.xlu0 %v1589_v13, %s3802_s22  ;;  %s3805_s24 = smov 16  }
 0xc57   : > { %v3514_v18 = vpop.permute.xlu1 %1593  ;;  %v3516_v16 = vpop.permute.xlu0 %1591 }
 0xc58   : > { %1693 = vrot.lane.b32.xlu0 %v3514_v18, %s3802_s22  ;;  %1645 = vrot.lane.b32.xlu1 %v3516_v16, %s3802_s22 }
 0xc5b   : > { %v3522_v17 = vpop.permute.xlu1 %1595  ;;  %v1598_v19 = vpop.permute.xlu0 %1597 }
 0xc5c   : > { %v1603_v20 = vsel %vm784_vm2, %v1598_v19, 0  ;;  %1741 = vrot.lane.b32.xlu1 %v3522_v17, %s3802_s22  ;;  %s3806_s22 = smov 24  }
 0xc5d   : > { %2850 = vmatpush3.bf16.xpose.msra.mxu0 %v1603_v20 }
 0xc5e   : > { %2861 = vmatprep.subr.bf16.mxu0 %v3128_v8 }
 0xc64   : > { %2852 = vmatmul.mubr.msk.bf16.vlgmr.msra.gmra.mxu0 %vm784_vm2, %v1589_v13 }
 0xc65   : > { %2863 = vmatprep.mubr.msk.bf16.mxu0 %vm3129_vm1, %v3128_v8 }
 0xcca   : > { %v1646_v21 = vpop.permute.xlu1 %1645  ;;  %v1694_v22 = vpop.permute.xlu0 %1693 }
 0xccb   : > { %v1651_v23 = vsel %vm784_vm2, %v1646_v21, 0  ;;  %v1699_v24 = vsel %vm784_vm2, %v1694_v22, 0 }
 0xccc   : > { %2856 = vmatpush3.bf16.xpose.msra.mxu1 %v1651_v23  ;;  %2862 = vmatpush3.bf16.xpose.msra.mxu0 %v1699_v24 }
 0xccd   : > { %2867 = vmatprep.subr.bf16.mxu1 %v3128_v8  ;;  %2873 = vmatprep.subr.bf16.mxu0 %v3128_v8 }
 0xcce   : > { %v1742_v25 = vpop.permute.xlu1 %1741 }
 0xccf   : > { %v1747_v26 = vsel %vm784_vm2, %v1742_v25, 0 }
 0xcd3   : > { %2858 = vmatmul.mubr.msk.bf16.vlgmr.msra.gmra.mxu1 %vm784_vm2, %v3516_v16  ;;  %2864 = vmatmul.mubr.msk.bf16.vlgmr.msra.gmra.mxu0 %vm784_vm2, %v3514_v18 }
 0xcd4   : > { %2868 = vmatpush3.bf16.xpose.msra.mxu1 %v1747_v26  ;;  %2869 = vmatprep.mubr.msk.bf16.mxu1 %vm3129_vm1, %v3128_v8 }
 0xcd5   : > { %2875 = vmatprep.mubr.msk.bf16.mxu0 %vm3129_vm1, %v3128_v8  ;;  %2879 = vmatprep.subr.bf16.mxu1 %v3128_v8 }
 0xcdb   : > { %2870 = vmatmul.mubr.msk.bf16.vlgmr.msra.gmra.mxu1 %vm784_vm2, %v3522_v17 }
 0xcdc   : > { %2881 = vmatprep.mubr.msk.bf16.mxu1 %vm3129_vm1, %v3128_v8 }
 0xd24   : > { %v1639_v27 = vpop.f32.mrf.mxu0 }
 0xd25   : > { %v1789_v28 = vsel %vm784_vm2, %v1639_v27, -inf }
 0xd26   : > { %1790 = vmax.xlane.f32.xlu0 %v1789_v28  ;;  %v2853_v29 = vpop.f32.mrf.mxu0 }
 0xd28   : > { %v1642_v30 = vpop.f32.mrf.mxu0 }
 0xd2a   : > { %v2854_v31 = vpop.f32.mrf.mxu0 }
 0xd93   : > { %v1687_v32 = vpop.f32.mrf.mxu1  ;;  %v1735_v33 = vpop.f32.mrf.mxu0 }
 0xd94   : > { %v1792_v34 = vsel %vm784_vm2, %v1687_v32, -inf  ;;  %v1795_v35 = vsel %vm784_vm2, %v1735_v33, -inf }
 0xd95   : > { %1793 = vmax.xlane.f32.xlu1 %v1792_v34  ;;  %v2859_v36 = vpop.f32.mrf.mxu1  ;;  %1796 = vmax.xlane.f32.xlu0 %v1795_v35  ;;  %v2865_v37 = vpop.f32.mrf.mxu0  ;;  %v3003_v34 = vld [vmem:[%s3795_s1 + $0x10] sm:$0xff]  }
 0xd97   : > { %v1690_v38 = vpop.f32.mrf.mxu1  ;;  %v1738_v39 = vpop.f32.mrf.mxu0 }
 0xd99   : > { %v2860_v40 = vpop.f32.mrf.mxu1  ;;  %v2866_v41 = vpop.f32.mrf.mxu0 }
 0xd9b   : > { %v1783_v42 = vpop.f32.mrf.mxu1 }
 0xd9c   : > { %v1798_v43 = vsel %vm784_vm2, %v1783_v42, -inf }
 0xd9d   : > { %v2871_v44 = vpop.f32.mrf.mxu1  ;;  %1799 = vmax.xlane.f32.xlu0 %v1798_v43 }
 0xd9f   : > { %v1786_v45 = vpop.f32.mrf.mxu1 }
 0xda1   : > { %v2872_v46 = vpop.f32.mrf.mxu1 }
 0xda6   : > { %1837 = vrot.lane.b32.xlu1 %v1589_v13, %s3803_s2 }
 0xdaf   : > { %v1791_v47 = vpop.xlane.xlu0 %1790 }
 0xdb0   : > { %v1801_v48 = vsub.f32 %v1639_v27, %v1791_v47 }
 0xdb2   : > { %v1805_v49 = vmul.f32 1.442695, %v1801_v48 }
 0xdb4   : > { %3038 = vpow2.f32 %v1805_v49 }
 0xdc1   : > { %v3039_v50 = vpop.eup %3038 }
 0xdc2   : > { %v1813_v51 = vsel %vm784_vm2, %v3039_v50, 0.0 }
 0xdca   : > { %1814 = vadd.xlane.f32.xlu1 %v1813_v51 }
 0xe1e   : > { %v1794_v52 = vpop.xlane.xlu1 %1793  ;;  %v1797_v53 = vpop.xlane.xlu0 %1796 }
 0xe1f   : > { %v1802_v54 = vsub.f32 %v1687_v32, %v1794_v52  ;;  %v1803_v55 = vsub.f32 %v1735_v33, %v1797_v53  ;;  %v3002_v33 = vld [vmem:[%s3795_s1 + $0x18] sm:$0xff]   ;;  %s2499_s1 = scalar_lea.hbm %s3749_s20, %s2688_s4 }
 0xe21   : > { %v1807_v56 = vmul.f32 1.442695, %v1802_v54  ;;  %v1809_v57 = vmul.f32 1.442695, %v1803_v55  ;;  %v2646_v54 = vld [vmem:[%s3796_s6 + $0x1] ss:$0 sm:$0xff] }
 0xe22   : > { %v1838_v58 = vpop.permute.xlu1 %1837  ;;  %s3807_s6 = sand.u32 1, %s3118_s25  }
 0xe23   : > { %3040 = vpow2.f32 %v1807_v56  ;;  %v1843_v59 = vsel %vm1028_vm3, %v1838_v58, 0 }
 0xe24   : > { %3042 = vpow2.f32 %v1809_v57  ;;  %2874 = vmatpush3.bf16.msra.mxu0 %v1843_v59 }
 0xe25   : > { %2885 = vmatprep.subr.bf16.mxu0 %v3128_v8 }
 0xe26   : > { %v1800_v60 = vpop.xlane.xlu0 %1799 }
 0xe27   : > { %v1804_v61 = vsub.f32 %v1783_v42, %v1800_v60 }
 0xe29   : > { %v1811_v62 = vmul.f32 1.442695, %v1804_v61 }
 0xe2b   : > { %3044 = vpow2.f32 %v1811_v62 }
 0xe30   : > { %v3041_v63 = vpop.eup %3040 }
 0xe31   : > { %v3043_v0 = vpop.eup %3042  ;;  %v1816_v1 = vsel %vm784_vm2, %v3041_v63, 0.0 }
 0xe32   : > { %1817 = vadd.xlane.f32.xlu0 %v1816_v1  ;;  %v1819_v2 = vsel %vm784_vm2, %v3043_v0, 0.0 }
 0xe33   : > { %1820 = vadd.xlane.f32.xlu1 %v1819_v2 }
 0xe38   : > { %v3045_v3 = vpop.eup %3044 }
 0xe39   : > { %v1822_v4 = vsel %vm784_vm2, %v3045_v3, 0.0 }
 0xe3a   : > { %1823 = vadd.xlane.f32.xlu0 %v1822_v4 }
 0xe44   : > { %1933 = vrot.lane.b32.xlu1 %v3514_v18, %s3803_s2 }
 0xe48   : > { %1981 = vrot.lane.b32.xlu1 %v3522_v17, %s3803_s2 }
 0xe50   : > { %1885 = vrot.lane.b32.xlu0 %v3516_v16, %s3803_s2 }
 0xe53   : > { %v1815_v5 = vpop.xlane.xlu1 %1814 }
 0xe54   : > { %3046 = vrcp.f32 %v1815_v5 }
 0xe61   : > { %v3047_v7 = vpop.eup %3046 }
 0xe62   : > { %v1829_v9 = vmul.f32 %v3047_v7, %v3039_v50 }
 0xe64   : > { %v1833_v10 = vpack.c.bf16 %v1829_v9, %v1829_v9 }
 0xe66   : > { %2876 = vmatmul.mubr.msk.bf16.vlgmr.msra.gmra.mxu0 %vm784_vm2, %v1833_v10  ;;  %v2652_v10 = vld [vmem:[%s3797_s7 + $0x1] ss:$0 sm:$0xff]  ;;  %s2486_s7 = scalar_lea.sflag [#allocation3], %s3807_s6 }
 0xe67   : > { %2887 = vmatprep.mubr.msk.bf16.mxu0 %vm3129_vm1, %v3128_v8 }
 0xebb   : > { %v1818_v11 = vpop.xlane.xlu0 %1817 }
 0xebc   : > { %v1821_v12 = vpop.xlane.xlu1 %1820  ;;  %3048 = vrcp.f32 %v1818_v11 }
 0xebd   : > { %3050 = vrcp.f32 %v1821_v12  ;;  %v2653_v12 = vld [vmem:[%s3798_s8 + $0x1] ss:$0 sm:$0xff] }
 0xec0   : > { %v1934_v13 = vpop.permute.xlu1 %1933 }
 0xec1   : > { %v1939_v14 = vsel %vm1028_vm3, %v1934_v13, 0 }
 0xec2   : > { %2886 = vmatpush3.bf16.msra.mxu0 %v1939_v14 }
 0xec3   : > { %v1824_v15 = vpop.xlane.xlu0 %1823  ;;  %2897 = vmatprep.subr.bf16.mxu0 %v3128_v8 }
 0xec4   : > { %3052 = vrcp.f32 %v1824_v15  ;;  %v1982_v21 = vpop.permute.xlu1 %1981 }
 0xec5   : > { %v1987_v25 = vsel %vm1028_vm3, %v1982_v21, 0 }
 0xec7   : > { %v1886_v18 = vpop.permute.xlu0 %1885 }
 0xec8   : > { %v1891_v16 = vsel %vm1028_vm3, %v1886_v18, 0  ;;  %v3006_v18 = vld [vmem:[%s3740_s11 + $0x38] sm:$0xff]  }
 0xec9   : > { %v3049_v17 = vpop.eup %3048  ;;  %2880 = vmatpush3.bf16.msra.mxu1 %v1891_v16  ;;  %v3007_v16 = vld [vmem:[%s3740_s11 + $0x30] sm:$0xff]  }
 0xeca   : > { %v3051_v19 = vpop.eup %3050  ;;  %2891 = vmatprep.subr.bf16.mxu1 %v3128_v8  ;;  %v1830_v20 = vmul.f32 %v3049_v17, %v3041_v63  ;;  %v3008_v17 = vld [vmem:[%s3740_s11 + $0x28] sm:$0xff]  }
 0xecb   : > { %v1831_v22 = vmul.f32 %v3051_v19, %v3043_v0  ;;  %v3009_v19 = vld [vmem:[%s3740_s11 + $0x20] sm:$0xff]  }
 0xecc   : > { %v1834_v23 = vpack.c.bf16 %v1830_v20, %v1830_v20  ;;  %v2659_v20 = vld [vmem:[%s3739_s10 + $0x1] ss:$0 sm:$0xff] }
 0xecd   : > { %v1835_v24 = vpack.c.bf16 %v1831_v22, %v1831_v22 }
 0xece   : > { %2882 = vmatmul.mubr.msk.bf16.vlgmr.msra.gmra.mxu1 %vm784_vm2, %v1834_v23 }
 0xecf   : > { %2888 = vmatmul.mubr.msk.bf16.vlgmr.msra.gmra.mxu0 %vm784_vm2, %v1835_v24  ;;  %2892 = vmatpush3.bf16.msra.mxu1 %v1987_v25 }
 0xed0   : > { %2893 = vmatprep.mubr.msk.bf16.mxu1 %vm3129_vm1, %v3128_v8  ;;  %2901 = vmatprep.mubr.msk.bf16.mxu0 %vm3129_vm1, %v3128_v8 }
 0xed1   : > { %v3053_v26 = vpop.eup %3052  ;;  %2905 = vmatprep.subr.bf16.mxu1 %v3128_v8  ;;  %2898 = vmatpush3.bf16.msra.mxu0 %v3002_v33 }
 0xed2   : > { %v1832_v27 = vmul.f32 %v3053_v26, %v3045_v3  ;;  %2899 = vmatprep.subr.bf16.mxu0 %v3128_v8  ;;  %v3004_v3 = vld [vmem:[%s3738_s9 + $0x18] sm:$0xff]  }
 0xed4   : > { %v1836_v28 = vpack.c.bf16 %v1832_v27, %v1832_v27 }
 0xed5   : > { %2900 = vmatpush3.bf16.msra.mxu0 %v3003_v34 }
 0xed6   : > { %2894 = vmatmul.mubr.msk.bf16.vlgmr.msra.gmra.mxu1 %vm784_vm2, %v1836_v28  ;;  %2913 = vmatprep.subr.bf16.mxu0 %v3128_v8 }
 0xed7   : > { %2909 = vmatprep.mubr.msk.bf16.mxu1 %vm3129_vm1, %v3128_v8  ;;  %2906 = vmatpush3.bf16.msra.mxu1 %v3004_v3 }
 0xed8   : > { %2907 = vmatprep.subr.bf16.mxu1 %v3128_v8 }
 0xf26   : > { %v1879_v29 = vpop.f32.mrf.mxu0 }
 0xf28   : > { %v2877_v30 = vpop.f32.mrf.mxu0 }
 0xf2a   : > { %v1882_v31 = vpop.f32.mrf.mxu0 }
 0xf2c   : > { %v2878_v32 = vpop.f32.mrf.mxu0 }
 0xf8e   : > { %v1927_v35 = vpop.f32.mrf.mxu1 }
 0xf8f   : > { %v1975_v36 = vpop.f32.mrf.mxu0  ;;  %2030 = vrot.lane.b32.xlu0 %v1927_v35, %s3804_s28 }
 0xf90   : > { %2034 = vrot.lane.b32.xlu1 %v1975_v36, %s3805_s24  ;;  %v2883_v37 = vpop.f32.mrf.mxu1  ;;  %v2672_v36 = vld [vmem:[%s3741_s12 + $0x1] ss:$0 sm:$0xff] }
 0xf91   : > { %v2889_v38 = vpop.f32.mrf.mxu0 }
 0xf92   : > { %v1930_v39 = vpop.f32.mrf.mxu1 }
 0xf93   : > { %v1978_v40 = vpop.f32.mrf.mxu0 }
 0xf94   : > { %v2884_v41 = vpop.f32.mrf.mxu1 }
 0xf95   : > { %v2890_v42 = vpop.f32.mrf.mxu0 }
 0xf96   : > { %v2023_v43 = vpop.f32.mrf.mxu1 }
 0xf97   : > { %2038 = vrot.lane.b32.xlu0 %v2023_v43, %s3806_s22  ;;  %s658_s22 = scalar_lea.vmem [#allocation2], %s3770_s26 }
 0xf98   : > { %v2895_v44 = vpop.f32.mrf.mxu1  ;;  %s2501_s28 = sshll.u32 %s658_s22, 4  ;;  %s2502_s28 = int_to_ptr.vmem [resolvable:$true] %s2501_s28 }
 0xf99   : > { %s3066_s2 = scalar_lea.vmem %s2502_s28, 16 }
 0xf9a   : > { %v2026_v45 = vpop.f32.mrf.mxu1  ;;  %p3067_p11 = scmp.ne.s32.totalorder %s2502_s28, %s3066_s2 }
 0xf9c   : > { %v2896_v46 = vpop.f32.mrf.mxu1  ;;  %p3068_p12 = pnand %p3067_p11, %p3287_p5 }
 0xf9e   : > { %p3069_p13 = pneg %p3068_p12 }
0x1001   : > { %v2031_v47 = vpop.permute.xlu0 %2030 }
0x1002   : > { %v2041_v48 = vsel %vm784_vm2, %v1879_v29, %v2031_v47  ;;  %v2035_v49 = vpop.permute.xlu1 %2034 }
0x1003   : > { %v2042_v50 = vsel %vm1229_vm4, %v2041_v48, %v2035_v49  ;;  %v3010_v49 = vld [vmem:[%s3744_s15 + $0x8] sm:$0xff]  }
0x1009   : > { %v2039_v51 = vpop.permute.xlu0 %2038 }
0x100a   : > { %v2043_v52 = vsel %vm1231_vm5, %v2042_v50, %v2039_v51  ;;  %v3011_v50 = vld [vmem:[%s3744_s15] sm:$0xff]  }
0x100b   : > { %v2044_v53 = vpack.c.bf16 %v2043_v52, %v2043_v52 }
0x100d   : > { %2902 = vmatmul.mubr.msk.bf16.vlgmr.msra.gmra.mxu0 %vm678_vm0, %v2044_v53 }
0x100e   : > { %2921 = vmatprep.mubr.msk.bf16.mxu0 %vm3129_vm1, %v3128_v8  ;;  %2914 = vmatpush3.bf16.msra.mxu0 %v3006_v18 }
0x100f   : > { %2915 = vmatprep.subr.bf16.mxu0 %v3128_v8 }
0x1012   : > { %2916 = vmatpush3.bf16.msra.mxu0 %v3007_v16 }
0x1013   : > { %2917 = vmatprep.subr.bf16.mxu0 %v3128_v8 }
0x1016   : > { %2918 = vmatpush3.bf16.msra.mxu0 %v3008_v17 }
0x1017   : > { %2919 = vmatprep.subr.bf16.mxu0 %v3128_v8 }
0x101a   : > { %2920 = vmatpush3.bf16.msra.mxu0 %v3009_v19 }
0x10cd   : > { %v2107_v55 = vpop.f32.mrf.mxu0 }
0x10ce   : > { %v2108_v56 = vadd.f32 %v2646_v54, %v2107_v55  ;;  %v2680_v55 = vld [vmem:[%s3742_s13 + $0x1] ss:$0 sm:$0xff] }
0x10cf   : > { %v2903_v57 = vpop.f32.mrf.mxu0 }
0x10d0   : > { %v2113_v58 = vadd.f32 %v2108_v56, %v3500_v6  ;;  %v3005_v6 = vld [vmem:[%s3738_s9 + $0x10] sm:$0xff]   ;;  %v2681_v57 = vld [vmem:[%s3743_s14 + $0x1] ss:$0 sm:$0xff] }
0x10d1   : > { %v2110_v59 = vpop.f32.mrf.mxu0  ;;  %2908 = vmatpush3.bf16.msra.mxu1 %v3005_v6 }
0x10d2   : > { %v2118_v60 = vsel %vm678_vm0, %v2113_v58, 0.0  ;;  %2925 = vmatprep.subr.bf16.mxu1 %v3128_v8 }
0x10d3   : > { %2119 = vadd.xlane.f32.xlu1 %v2118_v60  ;;  %v2904_v61 = vpop.f32.mrf.mxu0 }
0x10d4   : > { %v3012_v61 = vld [vmem:[%s3746_s17 + $0x8] sm:$0xff]  }
0x115c   : > { %v2120_v62 = vpop.xlane.xlu1 %2119 }
0x115d   : > { %v2121_v63 = vmul.f32 0.03125, %v2120_v62  ;;  %v3013_v62 = vld [vmem:[%s3746_s17] sm:$0xff]  }
0x115f   : > { %v2122_v0 = vsub.f32 %v2113_v58, %v2121_v63  ;;  %v2345_v63 = vld [vmem:[%s3745_s16] sm:$0x1] }
0x1161   : > { %v2123_v1 = vmul.f32 %v2122_v0, %v2122_v0 }
0x1163   : > { %v2124_v2 = vsel %vm678_vm0, %v2123_v1, 0.0 }
0x1164   : > { %2125 = vadd.xlane.f32.xlu0 %v2124_v2 }
0x11ed   : > { %v2126_v4 = vpop.xlane.xlu0 %2125 }
0x11ee   : > { %v2127_v5 = vmul.f32 0.03125, %v2126_v4 }
0x11f0   : > { %v2128_v7 = vadd.f32 1e-12, %v2127_v5 }
0x11f2   : > { %3054 = vrsqrt.f32 %v2128_v7 }
0x11ff   : > { %v3055_v9 = vpop.eup %3054 }
0x1200   : > { %v2130_v11 = vmul.f32 %v3055_v9, %v2122_v0 }
0x1202   : > { %v2137_v13 = vmul.f32 %v2652_v10, %v2130_v11 }
0x1204   : > { %v2144_v14 = vadd.f32 %v2653_v12, %v2137_v13 }
0x1206   : > { %v2145_v15 = vpack.c.bf16 %v2144_v14, %v2144_v14 }
0x1208   : > { %2910 = vmatmul.mubr.msk.bf16.vlgmr.msra.gmra.mxu1 %vm678_vm0, %v2145_v15 }
0x1209   : > { %2929 = vmatprep.mubr.msk.bf16.mxu1 %vm3129_vm1, %v3128_v8  ;;  %2926 = vmatpush3.bf16.msra.mxu1 %v3010_v49 }
0x120a   : > { %2927 = vmatprep.subr.bf16.mxu1 %v3128_v8 }
0x120d   : > { %2928 = vmatpush3.bf16.msra.mxu1 %v3011_v50 }
0x120e   : > { %2933 = vmatprep.subr.bf16.mxu1 %v3128_v8 }
0x12c8   : > { %v2208_v21 = vpop.f32.mrf.mxu1 }
0x12c9   : > { %v2209_v22 = vadd.f32 %v2659_v20, %v2208_v21 }
0x12ca   : > { %v2911_v23 = vpop.f32.mrf.mxu1 }
0x12cb   : > { %v2215_v24 = vmul.f32 0.044715, %v2209_v22  ;;  %v2214_v32 = vmul.f32 0.5, %v2209_v22 }
0x12cc   : > { %v2211_v25 = vpop.f32.mrf.mxu1 }
0x12cd   : > { %v2216_v26 = vmul.f32 %v2215_v24, %v2209_v22 }
0x12ce   : > { %v2912_v27 = vpop.f32.mrf.mxu1 }
0x12cf   : > { %v2217_v28 = vmul.f32 %v2216_v26, %v2209_v22 }
0x12d1   : > { %v2218_v29 = vadd.f32 %v2217_v28, %v2209_v22  ;;  %v2476_v22 = vld [vmem:[%s670_s0] sm:$0x1]  ;;  %s3070_s0 = sshll.u32 %s3138_s27, 4  ;;  %s3071_s0 = int_to_ptr.vmem [resolvable:$false] %s3070_s0 }
0x12d2   : > { %s3072_s8 = scalar_lea.vmem %s3071_s0, 32  ;;  %p3073_p0 = scmp.lt.s32.totalorder %s2502_s28, %s3071_s0 }
0x12d3   : > { %v2219_v30 = vmul.f32 0.7978846, %v2218_v29  ;;  %p3074_p1 = scmp.lt.s32.totalorder %s3072_s8, %s3066_s2 }
0x12d5   : > { %3056 = vtanh.f32 %v2219_v30  ;;  %p3075_p2 = por %p3074_p1, %p3073_p0 }
0x12d7   : > { %p3076_p3 = pnand %p3075_p2, %p3069_p13 }
0x12e2   : > { %v3057_v31 = vpop.eup %3056 }
0x12e3   : > { %v2221_v33 = vadd.f32 1.0, %v3057_v31 }
0x12e5   : > { %v2222_v34 = vmul.f32 %v2221_v33, %v2214_v32 }
0x12e7   : > { %v2223_v35 = vpack.c.bf16 %v2222_v34, %v2222_v34 }
0x12e9   : > { %2922 = vmatmul.mubr.msk.bf16.vlgmr.msra.gmra.mxu0 %vm1446_vm6, %v2223_v35 }
0x13a9   : > { %v2302_v37 = vpop.f32.mrf.mxu0 }
0x13aa   : > { %v2303_v38 = vadd.f32 %v2672_v36, %v2302_v37 }
0x13ab   : > { %v2923_v39 = vpop.f32.mrf.mxu0 }
0x13ac   : > { %v2308_v40 = vadd.f32 %v2303_v38, %v2144_v14 }
0x13ad   : > { %v2305_v41 = vpop.f32.mrf.mxu0 }
0x13ae   : > { %v2313_v42 = vsel %vm678_vm0, %v2308_v40, 0.0 }
0x13af   : > { %2314 = vadd.xlane.f32.xlu0 %v2313_v42  ;;  %v2924_v43 = vpop.f32.mrf.mxu0 }
0x1438   : > { %v2315_v44 = vpop.xlane.xlu0 %2314 }
0x1439   : > { %v2316_v45 = vmul.f32 0.03125, %v2315_v44 }
0x143b   : > { %v2317_v46 = vsub.f32 %v2308_v40, %v2316_v45 }
0x143d   : > { %v2318_v47 = vmul.f32 %v2317_v46, %v2317_v46 }
0x143f   : > { %v2319_v48 = vsel %vm678_vm0, %v2318_v47, 0.0 }
0x1440   : > { %2320 = vadd.xlane.f32.xlu1 %v2319_v48 }
0x14c9   : > { %v2321_v51 = vpop.xlane.xlu1 %2320 }
0x14ca   : > { %v2322_v52 = vmul.f32 0.03125, %v2321_v51 }
0x14cc   : > { %v2323_v53 = vadd.f32 1e-12, %v2322_v52 }
0x14ce   : > { %3058 = vrsqrt.f32 %v2323_v53 }
0x14db   : > { %v3059_v54 = vpop.eup %3058 }
0x14dc   : > { %v2325_v56 = vmul.f32 %v3059_v54, %v2317_v46 }
0x14de   : > { %v2332_v58 = vmul.f32 %v2680_v55, %v2325_v56 }
0x14e0   : > { %v2339_v59 = vadd.f32 %v2681_v57, %v2332_v58 }
0x14e2   : > { %v2340_v60 = vpack.c.bf16 %v2339_v59, %v2339_v59 }
0x14e4   : > { %2930 = vmatmul.mubr.msk.bf16.vlgmr.msra.gmra.mxu1 %vm678_vm0, %v2340_v60 }
0x14e5   : > { %2937 = vmatprep.mubr.msk.bf16.mxu1 %vm3129_vm1, %v3128_v8  ;;  %2934 = vmatpush3.bf16.msra.mxu1 %v3012_v61 }
0x14e6   : > { %2935 = vmatprep.subr.bf16.mxu1 %v3128_v8  ;;  %v2407_v8 = vld [vmem:[%s3747_s18] sm:$0x1] }
0x14e9   : > { %2936 = vmatpush3.bf16.msra.mxu1 %v3013_v62 }
0x15a4   : > { %v2395_v0 = vpop.f32.mrf.mxu1 }
0x15a5   : > { %v2396_v1 = vadd.f32 %v2395_v0, %v2345_v63 }
0x15a6   : > { %v2931_v2 = vpop.f32.mrf.mxu1 }
0x15a7   : > { %3060 = vtanh.f32 %v2396_v1 }
0x15a8   : > { %v2398_v3 = vpop.f32.mrf.mxu1 }
0x15aa   : > { %v2932_v6 = vpop.f32.mrf.mxu1 }
0x15b4   : > { %v3061_v4 = vpop.eup %3060 }
0x15b5   : > { %v2402_v5 = vpack.c.bf16 %v3061_v4, %v3061_v4 }
0x15b7   : > { %2938 = vmatmul.mubr.msk.bf16.vlgmr.msra.gmra.mxu1 %vm678_vm0, %v2402_v5 }
0x1677   : > { %v2457_v7 = vpop.f32.mrf.mxu1 }
0x1678   : > { %v2458_v9 = vadd.f32 %v2457_v7, %v2407_v8 }
0x1679   : > { %v2939_v10 = vpop.f32.mrf.mxu1 }
0x167a   : > { %v2465_v11 = vsel %vm2463_vm7, %v2458_v9, -inf  ;;  %2464 = vst.msk [vmem:[%s658_s22] sm:$0x1] %vm2463_vm7, %v2458_v9 }
0x167b   : > { %2466 = vmax.xlane.f32.xlu0 %v2465_v11  ;;  %v2460_v12 = vpop.f32.mrf.mxu1 }
0x167d   : > { %v2940_v13 = vpop.f32.mrf.mxu1 }
0x1704   : > { %v2467_v14 = vpop.xlane.xlu0 %2466 }
0x1705   : > { %v2468_v15 = vsub.f32 %v2458_v9, %v2467_v14 }
0x1707   : > { %v2469_v18 = vmul.f32 1.442695, %v2468_v15 }
0x1709   : > { %3062 = vpow2.f32 %v2469_v18 }
0x1716   : > { %v3063_v16 = vpop.eup %3062 }
0x1717   : > { %v2471_v17 = vsel %vm2463_vm7, %v3063_v16, 0.0 }
0x1718   : > { %2472 = vadd.xlane.f32.xlu1 %v2471_v17 }
0x17a1   : > { %v2473_v19 = vpop.xlane.xlu1 %2472 }
0x17a2   : > { %3064 = vlog2.f32 %v2473_v19 }
0x17af   : > { %v3065_v20 = vpop.eup %3064 }
0x17b0   : > { %v2475_v21 = vmul.f32 0.6931472, %v3065_v20 }
0x17b2   : > { %v2477_v23 = vsub.f32 %v2468_v15, %v2475_v21 }
0x17b4   : > { %v2478_v24 = vmul.f32 %v2477_v23, %v2476_v22 }
0x17b6   : > { %v2479_v25 = vsel %vm2463_vm7, %v2478_v24, 0.0 }
0x17b7   : > { %2480 = vadd.xlane.f32.xlu0 %v2479_v25 }
0x17b8   : > { %3079 = shalt.err (!%p3076_p3)
}
0x17b9   : > { %s3080_s3 = scalar_lea.hbm %s2499_s1, 16  ;;  %s3084_s22 = scalar_lea.hbm %s3749_s20, 32 }
0x17ba   : > { %p3081_p4 = scmp.ne.s32.totalorder %s2499_s1, %s3080_s3  ;;  %p3085_p9 = scmp.lt.s32.totalorder %s2499_s1, %s3749_s20 }
0x17bb   : > { %p3086_p10 = scmp.lt.s32.totalorder %s3084_s22, %s3080_s3 }
0x17bc   : > { %p3082_p7 = pnand %p3081_p4, %p3287_p5 }
0x17bd   : > { %p3087_p11 = por %p3086_p10, %p3085_p9 }
0x17be   : > { %p3083_p8 = pneg %p3082_p7 }
0x17c0   : > { %p3088_p12 = pnand %p3087_p11, %p3083_p8 }
0x17c2   : > { %3091 = shalt.err (!%p3088_p12)
}
0x17c3   : > { %2941 = dma.vmem_to_hbm [thread:$0]  (%p3287_p5), %s2502_s28, 16, %s2499_s1, %s2486_s7   ;;  %vm2483_vm8 = vcmask 0  }
0x17c4   : > { %s673_s27 = scalar_lea.vmem %s3750_s21, %s3299_s23 }
0x1840   : > { %v2481_v26 = vpop.xlane.xlu0 %2480 }
0x1841   : > { %v2482_v27 = vsub.f32 0.0, %v2481_v26 }
0x1843   : > { %2484 = vst.msk [vmem:[%s673_s27] sm:$0x1] %vm2483_vm8, %v2482_v27 }
0x1844 PF: > { %s3808_s0 = sld [smem:[#allocation7_spill]] }
0x1845   : > { %s3809_s6 = sld [smem:[#allocation5_spill]] }
0x184a   : > { %p2947_p13 = scmp.ge.s32.totalorder %s3808_s0, 2 }
0x184b   : > { %s2516_s3 = sand.u32 1, %s3809_s6  }
0x184c   : > { %p2944_p0 = pnand %p2947_p13, %p3291_p6  ;;  %s2517_s5 = scalar_lea.sflag [#allocation3], %s2516_s3 }
0x184e   : > { %p2945_p1 = pneg %p2944_p0 }
0x1850   : > { %3109 = dma.done.wait (%p2945_p1), %s2517_s5, 16  }
0x1851   : > { %3111 = vsyncadd (%p2945_p1), %s2517_s5, 4294967280  ;;  %s3811_s27 = sld [smem:[#allocation8_spill]]  ;;  %s3814_s2 = smov %s3118_s25 }
0x1852   : > { %s3812_s7 = sld [smem:[#allocation6_spill]] }
0x1853   : > { %s3813_s26 = sld [smem:[#allocation9_spill]] }
0x1857   : > { %p32_p5 = scmp.ge.s32.totalorder %s3811_s27, 4  }
0x1858   : > { %s3815_s25 = smov %s3812_s7 }
0x1859   :  { %34 = sbr.rel (!%p32_p5) target bundleno = 13 (0xd), region = 162 }
0x185e   :  { %2527 = vsyncpa [#allocation3], 1 }
0x185f   :  { %2529 = vsyncpa [#allocation3 + $0x1], 1 }

</bundles_post_ra>
